<compile_context>
chip_gen: v5e
topology: v5e:2x2
jax: 0.10.0
libtpu: 0.0.40
codegen_flags: <defaults>
</compile_context>

<pallas_src>
from typing import NamedTuple

import jax
import jax.numpy as jnp
from jax.experimental import pallas as pl
from jax.experimental.pallas import tpu as pltpu

HIDDEN = 256
_SUBLANE = 16          # batch tiles rounded to 16 rows: legal for f32 (8) and bf16 (16) blocks
_MAX_BATCH_TILE = 1024  # large-batch tile (review: 512 -> 1024; per-step compute >> 0.35 us)

# Resolved lazily on first forward call: whether pl.Buffered(1) single-buffering of the
# grid-invariant weight blocks lowers cleanly on this jax/libtpu build.
_SINGLE_BUFFER_WEIGHTS_OK = None


class PreparedParams(NamedTuple):
    """One-time prepared (fused / padded / cast) parameters."""
    w1: jax.Array
    b1: jax.Array
    w2: jax.Array
    b2: jax.Array
    w3: jax.Array
    b3: jax.Array
    head_w: jax.Array   # (HIDDEN, head_pad): [actor | critic | zero pad], lane-dense 128 multiple
    head_b: jax.Array   # (1, head_pad)
    out_dims: int       # static: actor width (critic is the next single column)
    out_dtype: jnp.dtype


def pponn_kernel(x_ref, w1_ref, b1_ref, w2_ref, b2_ref, w3_ref, b3_ref,
                 wh_ref, bh_ref, out_ref):
    """Fused MLP trunk + (actor|critic) head.

    All dots accumulate in f32 on the MXU; biases / ReLU stay f32; only the MXU
    operands are in `dot_dtype` (f32 or bf16).  The single output store is a
    lane-dense (tile, 128*k) unmasked vst.
    """
    dot_dtype = w1_ref.dtype                       # MXU operand dtype (f32 or bf16)

    # trunk: Linear -> ReLU, three times.  Biases are (1, out) -> one broadcast/layer.
    h = jnp.dot(x_ref[...].astype(dot_dtype), w1_ref[...],
                preferred_element_type=jnp.float32) + b1_ref[...]
    h = jnp.maximum(h, 0.0)
    h = jnp.dot(h.astype(dot_dtype), w2_ref[...],
                preferred_element_type=jnp.float32) + b2_ref[...]
    h = jnp.maximum(h, 0.0)
    h = jnp.dot(h.astype(dot_dtype), w3_ref[...],
                preferred_element_type=jnp.float32) + b3_ref[...]
    h = jnp.maximum(h, 0.0)

    # fused head: one MXU push, one lane-dense output block store.
    out_ref[...] = (jnp.dot(h.astype(dot_dtype), wh_ref[...],
                            preferred_element_type=jnp.float32)
                    + bh_ref[...]).astype(out_ref.dtype)


def _num_tensorcores_per_device():
    """Heuristic TC count per JAX device: 1 on v5e/v6e, 2 on v7x / megacore parts."""
    try:
        kind = jax.devices()[0].device_kind.lower()
    except Exception:
        return 1
    if "lite" in kind or "v5e" in kind or "v6e" in kind or "v2" in kind or "v3" in kind:
        return 1
    return 2  # v4 / v5p megacore, v7x


def _choose_batch_tile(B, num_tc):
    """Generation-aware batch tile.

    Single-TC chips: the grid is a sequential loop -> never split just to
    'parallelize'; one full-extent block up to 1024 rows, then 1024-row tiles.
    Multi-TC devices: >=2 grid steps so the 'parallel' axis shards across cores
    (except tiny batches where the duplicated weight DMA dominates).
    """
    if num_tc <= 1:
        return B if B <= _MAX_BATCH_TILE else _MAX_BATCH_TILE
    if B < 2 * _SUBLANE:
        return B
    if B <= 2 * _MAX_BATCH_TILE:
        half = -(-B // 2)
        return -(-half // _SUBLANE) * _SUBLANE
    return _MAX_BATCH_TILE


def prepare_params(params, *, compute_dtype=jnp.bfloat16, out_dtype=None):
    """One-time param prep: fuse actor+critic into a single head, zero-pad its
    output lanes to a multiple of 128, and cast weights to the MXU operand dtype.
    Biases stay f32 (they are added to the f32 accumulator)."""
    (w1, b1), (w2, b2), (w3, b3), (wa, ba), (wc, bc) = params
    out_dims = int(wa.shape[1])
    head_cols = out_dims + 1
    head_pad = -(-head_cols // 128) * 128

    head_w = jnp.pad(jnp.concatenate([wa, wc], axis=1),
                     ((0, 0), (0, head_pad - head_cols)))
    ba2 = jnp.asarray(ba).reshape(1, -1)
    bc2 = jnp.asarray(bc).reshape(1, -1)
    head_b = jnp.pad(jnp.concatenate([ba2, bc2], axis=1),
                     ((0, 0), (0, head_pad - head_cols)))

    if out_dtype is None:
        out_dtype = compute_dtype
    cw = lambda w: jnp.asarray(w).astype(compute_dtype)
    cb = lambda b: jnp.asarray(b).reshape(1, -1).astype(jnp.float32)

    return PreparedParams(
        w1=cw(w1), b1=cb(b1), w2=cw(w2), b2=cb(b2), w3=cw(w3), b3=cb(b3),
        head_w=cw(head_w), head_b=head_b.astype(jnp.float32),
        out_dims=out_dims, out_dtype=jnp.dtype(out_dtype))


def pponn_forward(x, prep: PreparedParams, *, batch_tile=None, split_heads=True):
    """Forward pass.  `prep` must come from prepare_params() (no per-call weight prep)."""
    global _SINGLE_BUFFER_WEIGHTS_OK

    B, D = x.shape
    assert D == prep.w1.shape[0], "input feature dim mismatch with prepared params"
    head_pad = prep.head_w.shape[1]

    if batch_tile is None:
        batch_tile = _choose_batch_tile(B, _num_tensorcores_per_device())
    batch_tile = max(1, min(int(batch_tile), B))
    grid = (pl.cdiv(B, batch_tile),)

    def run(single_buffer_weights):
        def wspec(shape):
            # Grid-invariant blocks (index_map always (0,0)): Pallas skips re-DMA of
            # unchanged blocks; single-buffer them to save VMEM + descriptor setup.
            if single_buffer_weights:
                return pl.BlockSpec(shape, lambda i: (0, 0),
                                    pipeline_mode=pl.Buffered(1))
            return pl.BlockSpec(shape, lambda i: (0, 0))

        return pl.pallas_call(
            pponn_kernel,
            out_shape=jax.ShapeDtypeStruct((B, head_pad), prep.out_dtype),
            grid_spec=pltpu.PrefetchScalarGridSpec(
                num_scalar_prefetch=0,
                grid=grid,
                in_specs=[
                    pl.BlockSpec((batch_tile, D), lambda i: (i, 0)),
                    wspec(prep.w1.shape), wspec(prep.b1.shape),
                    wspec(prep.w2.shape), wspec(prep.b2.shape),
                    wspec(prep.w3.shape), wspec(prep.b3.shape),
                    wspec(prep.head_w.shape), wspec(prep.head_b.shape),
                ],
                out_specs=pl.BlockSpec((batch_tile, head_pad), lambda i: (i, 0)),
            ),
            compiler_params=pltpu.CompilerParams(
                dimension_semantics=("parallel",)),
        )(x, prep.w1, prep.b1, prep.w2, prep.b2, prep.w3, prep.b3,
          prep.head_w, prep.head_b)

    if _SINGLE_BUFFER_WEIGHTS_OK is None:
        try:
            out = run(True)
            _SINGLE_BUFFER_WEIGHTS_OK = True
        except Exception:
            out = run(False)
            _SINGLE_BUFFER_WEIGHTS_OK = False
    else:
        out = run(_SINGLE_BUFFER_WEIGHTS_OK)

    if not split_heads:
        # Padded (B, head_pad) block: columns [0, out_dims) = actor, out_dims = critic,
        # rest exact zeros.  Slice at point of use to avoid materializing the slices.
        return out
    actor = out[:, :prep.out_dims]
    critic = out[:, prep.out_dims:prep.out_dims + 1]
    return actor, critic


def init_params(key, input_dims, output_dims):
    """PyTorch-like Linear init: uniform(-1/sqrt(fan_in), +1/sqrt(fan_in)) weights,
    zero biases (matching PPONN._initialise_weights).  Weights stored (in, out)."""
    def linear(key, fan_in, fan_out):
        bound = 1.0 / jnp.sqrt(jnp.float32(fan_in))
        w = jax.random.uniform(key, (fan_in, fan_out), jnp.float32, -bound, bound)
        b = jnp.zeros((1, fan_out), jnp.float32)
        return w, b

    k1, k2, k3, ka, kc = jax.random.split(key, 5)
    return (linear(k1, input_dims, HIDDEN),
            linear(k2, HIDDEN, HIDDEN),
            linear(k3, HIDDEN, HIDDEN),
            linear(ka, HIDDEN, output_dims),
            linear(kc, HIDDEN, 1))


def reference_forward(x, params, compute_dtype=jnp.float32):
    """Pure-JAX reference mirroring the kernel numerics (operands in compute_dtype,
    f32 accumulation / bias / ReLU)."""
    (w1, b1), (w2, b2), (w3, b3), (wa, ba), (wc, bc) = params
    c = lambda a: a.astype(compute_dtype)
    dot = lambda a, b: jnp.dot(c(a), c(b), preferred_element_type=jnp.float32)
    h = jnp.maximum(dot(x, w1) + b1, 0.0)
    h = jnp.maximum(dot(h, w2) + b2, 0.0)
    h = jnp.maximum(dot(h, w3) + b3, 0.0)
    return dot(h, wa) + ba, dot(h, wc) + bc


if __name__ == "__main__":
    key = jax.random.PRNGKey(0)
    kx, kp, kx2 = jax.random.split(key, 3)

    batch, input_dims, output_dims = 8, 64, 8
    x = jax.random.normal(kx, (batch, input_dims), jnp.float32)
    params = init_params(kp, input_dims, output_dims)

    # ---- f32 operand / f32 output path: near-exact vs. pure-JAX reference ----
    prep_f32 = prepare_params(params, compute_dtype=jnp.float32, out_dtype=jnp.float32)
    actor, critic = pponn_forward(x, prep_f32)
    jax.block_until_ready((actor, critic))
    ref_a, ref_c = reference_forward(x, params, compute_dtype=jnp.float32)
    assert actor.shape == (batch, output_dims) and critic.shape == (batch, 1)
    assert jnp.allclose(actor, ref_a, atol=1e-4, rtol=1e-4)
    assert jnp.allclose(critic, ref_c, atol=1e-4, rtol=1e-4)

    # ---- default fast path: bf16 MXU operands + bf16 output, f32 accumulation ----
    prep_bf16 = prepare_params(params)          # compute_dtype=bf16, out_dtype=bf16
    actor_bf, critic_bf = pponn_forward(x, prep_bf16)
    jax.block_until_ready((actor_bf, critic_bf))
    ref_ab, ref_cb = reference_forward(x, params, compute_dtype=jnp.bfloat16)
    assert actor_bf.dtype == jnp.bfloat16 and critic_bf.dtype == jnp.bfloat16
    assert jnp.allclose(actor_bf.astype(jnp.float32), ref_ab, atol=5e-2, rtol=5e-2)
    assert jnp.allclose(critic_bf.astype(jnp.float32), ref_cb, atol=5e-2, rtol=5e-2)

    # ---- larger ragged batch: default (generation-aware) tiling ----
    big_b = 300
    xb = jax.random.normal(kx2, (big_b, input_dims), jnp.float32)
    actor_b, critic_b = pponn_forward(xb, prep_f32)
    jax.block_until_ready((actor_b, critic_b))
    ref_ab2, ref_cb2 = reference_forward(xb, params, compute_dtype=jnp.float32)
    assert actor_b.shape == (big_b, output_dims) and critic_b.shape == (big_b, 1)
    assert jnp.allclose(actor_b, ref_ab2, atol=1e-4, rtol=1e-4)
    assert jnp.allclose(critic_b, ref_cb2, atol=1e-4, rtol=1e-4)

    # ---- explicit multi-step grid with a partial last tile (exercised on any chip) ----
    actor_t, critic_t = pponn_forward(xb, prep_f32, batch_tile=128)
    jax.block_until_ready((actor_t, critic_t))
    assert jnp.allclose(actor_t, ref_ab2, atol=1e-4, rtol=1e-4)
    assert jnp.allclose(critic_t, ref_cb2, atol=1e-4, rtol=1e-4)

    # ---- bf16 fast path on the larger batch, padded (unsplit) output variant ----
    out_padded = pponn_forward(xb, prep_bf16, split_heads=False)
    jax.block_until_ready(out_padded)
    ref_ab3, ref_cb3 = reference_forward(xb, params, compute_dtype=jnp.bfloat16)
    assert out_padded.shape == (big_b, 128)
    assert jnp.allclose(out_padded[:, :output_dims].astype(jnp.float32),
                        ref_ab3, atol=5e-2, rtol=5e-2)
    assert jnp.allclose(out_padded[:, output_dims:output_dims + 1].astype(jnp.float32),
                        ref_cb3, atol=5e-2, rtol=5e-2)

    print("KERNEL_OK")
</pallas_src>

<mosaic_0001>
module attributes {stable_mosaic.version = 11 : i64} {
  func.func @pponn_kernel(%arg0: i32, %arg1: memref<8x64xf32, #tpu.memory_space<vmem>>, %arg2: memref<64x256xf32, #tpu.memory_space<vmem>>, %arg3: memref<1x256xf32, #tpu.memory_space<vmem>>, %arg4: memref<256x256xf32, #tpu.memory_space<vmem>>, %arg5: memref<1x256xf32, #tpu.memory_space<vmem>>, %arg6: memref<256x256xf32, #tpu.memory_space<vmem>>, %arg7: memref<1x256xf32, #tpu.memory_space<vmem>>, %arg8: memref<256x128xf32, #tpu.memory_space<vmem>>, %arg9: memref<1x128xf32, #tpu.memory_space<vmem>>, %arg10: memref<8x128xf32, #tpu.memory_space<vmem>>) attributes {dimension_semantics = [#tpu.dimension_semantics<parallel>], iteration_bounds = array<i64: 1>, scalar_prefetch = 0 : i64, scratch_operands = 0 : i64, tpu.core_type = #tpu.core_type<tc>, window_params = [{transform_indices = @transform_0, window_bounds = array<i64: 8, 64>}, {pipeline_mode = #tpu.pipeline_mode<synchronous>, transform_indices = @transform_1, window_bounds = array<i64: 64, 256>}, {pipeline_mode = #tpu.pipeline_mode<synchronous>, transform_indices = @transform_2, window_bounds = array<i64: 1, 256>}, {pipeline_mode = #tpu.pipeline_mode<synchronous>, transform_indices = @transform_3, window_bounds = array<i64: 256, 256>}, {pipeline_mode = #tpu.pipeline_mode<synchronous>, transform_indices = @transform_4, window_bounds = array<i64: 1, 256>}, {pipeline_mode = #tpu.pipeline_mode<synchronous>, transform_indices = @transform_5, window_bounds = array<i64: 256, 256>}, {pipeline_mode = #tpu.pipeline_mode<synchronous>, transform_indices = @transform_6, window_bounds = array<i64: 1, 256>}, {pipeline_mode = #tpu.pipeline_mode<synchronous>, transform_indices = @transform_7, window_bounds = array<i64: 256, 128>}, {pipeline_mode = #tpu.pipeline_mode<synchronous>, transform_indices = @transform_8, window_bounds = array<i64: 1, 128>}, {transform_indices = @transform_9, window_bounds = array<i64: 8, 128>}]} {
    %c0 = arith.constant 0 : index
    %c0_0 = arith.constant 0 : index
    %0 = vector.load %arg1[%c0, %c0_0] : memref<8x64xf32, #tpu.memory_space<vmem>>, vector<8x64xf32>
    %c0_1 = arith.constant 0 : index
    %c0_2 = arith.constant 0 : index
    %1 = vector.load %arg2[%c0_1, %c0_2] : memref<64x256xf32, #tpu.memory_space<vmem>>, vector<64x256xf32>
    %cst = arith.constant dense<0.000000e+00> : vector<8x256xf32>
    %2 = tpu.matmul %0, %1, %cst {dimension_numbers = #tpu.dot_dimension_numbers<[1], [0], [0], [1], [0, 0, 1, 1], [], []>} : vector<8x64xf32>, vector<64x256xf32>, vector<8x256xf32> -> vector<8x256xf32>
    %c0_3 = arith.constant 0 : index
    %c0_4 = arith.constant 0 : index
    %3 = vector.load %arg3[%c0_3, %c0_4] : memref<1x256xf32, #tpu.memory_space<vmem>>, vector<1x256xf32>
    %4 = vector.broadcast %3 : vector<1x256xf32> to vector<8x256xf32>
    %5 = arith.addf %2, %4 : vector<8x256xf32>
    %cst_5 = arith.constant 0.000000e+00 : f32
    %6 = vector.broadcast %cst_5 : f32 to vector<8x256xf32>
    %7 = arith.maximumf %5, %6 : vector<8x256xf32>
    %c0_6 = arith.constant 0 : index
    %c0_7 = arith.constant 0 : index
    %8 = vector.load %arg4[%c0_6, %c0_7] : memref<256x256xf32, #tpu.memory_space<vmem>>, vector<256x256xf32>
    %cst_8 = arith.constant dense<0.000000e+00> : vector<8x256xf32>
    %9 = tpu.matmul %7, %8, %cst_8 {dimension_numbers = #tpu.dot_dimension_numbers<[1], [0], [0], [1], [0, 0, 1, 1], [], []>} : vector<8x256xf32>, vector<256x256xf32>, vector<8x256xf32> -> vector<8x256xf32>
    %c0_9 = arith.constant 0 : index
    %c0_10 = arith.constant 0 : index
    %10 = vector.load %arg5[%c0_9, %c0_10] : memref<1x256xf32, #tpu.memory_space<vmem>>, vector<1x256xf32>
    %11 = vector.broadcast %10 : vector<1x256xf32> to vector<8x256xf32>
    %12 = arith.addf %9, %11 : vector<8x256xf32>
    %cst_11 = arith.constant 0.000000e+00 : f32
    %13 = vector.broadcast %cst_11 : f32 to vector<8x256xf32>
    %14 = arith.maximumf %12, %13 : vector<8x256xf32>
    %c0_12 = arith.constant 0 : index
    %c0_13 = arith.constant 0 : index
    %15 = vector.load %arg6[%c0_12, %c0_13] : memref<256x256xf32, #tpu.memory_space<vmem>>, vector<256x256xf32>
    %cst_14 = arith.constant dense<0.000000e+00> : vector<8x256xf32>
    %16 = tpu.matmul %14, %15, %cst_14 {dimension_numbers = #tpu.dot_dimension_numbers<[1], [0], [0], [1], [0, 0, 1, 1], [], []>} : vector<8x256xf32>, vector<256x256xf32>, vector<8x256xf32> -> vector<8x256xf32>
    %c0_15 = arith.constant 0 : index
    %c0_16 = arith.constant 0 : index
    %17 = vector.load %arg7[%c0_15, %c0_16] : memref<1x256xf32, #tpu.memory_space<vmem>>, vector<1x256xf32>
    %18 = vector.broadcast %17 : vector<1x256xf32> to vector<8x256xf32>
    %19 = arith.addf %16, %18 : vector<8x256xf32>
    %cst_17 = arith.constant 0.000000e+00 : f32
    %20 = vector.broadcast %cst_17 : f32 to vector<8x256xf32>
    %21 = arith.maximumf %19, %20 : vector<8x256xf32>
    %c0_18 = arith.constant 0 : index
    %c0_19 = arith.constant 0 : index
    %22 = vector.load %arg8[%c0_18, %c0_19] : memref<256x128xf32, #tpu.memory_space<vmem>>, vector<256x128xf32>
    %cst_20 = arith.constant dense<0.000000e+00> : vector<8x128xf32>
    %23 = tpu.matmul %21, %22, %cst_20 {dimension_numbers = #tpu.dot_dimension_numbers<[1], [0], [0], [1], [0, 0, 1, 1], [], []>} : vector<8x256xf32>, vector<256x128xf32>, vector<8x128xf32> -> vector<8x128xf32>
    %c0_21 = arith.constant 0 : index
    %c0_22 = arith.constant 0 : index
    %24 = vector.load %arg9[%c0_21, %c0_22] : memref<1x128xf32, #tpu.memory_space<vmem>>, vector<1x128xf32>
    %25 = vector.broadcast %24 : vector<1x128xf32> to vector<8x128xf32>
    %26 = arith.addf %23, %25 : vector<8x128xf32>
    %c0_23 = arith.constant 0 : index
    %c0_24 = arith.constant 0 : index
    %27 = vector.load %arg10[%c0_23, %c0_24] : memref<8x128xf32, #tpu.memory_space<vmem>>, vector<8x128xf32>
    tpu.vector_store %arg10[%c0_23, %c0_24], %26 {strides = array<i32>} : memref<8x128xf32, #tpu.memory_space<vmem>>, vector<8x128xf32>,
    return
  }
  func.func @transform_0(%arg0: i32) -> (i32, i32) {
    %c0_i32 = arith.constant 0 : i32
    %c0_i32_0 = arith.constant 0 : i32
    return %arg0, %c0_i32 : i32, i32
  }
  func.func @transform_1(%arg0: i32) -> (i32, i32) {
    %c0_i32 = arith.constant 0 : i32
    %c0_i32_0 = arith.constant 0 : i32
    %c0_i32_1 = arith.constant 0 : i32
    return %c0_i32, %c0_i32_0 : i32, i32
  }
  func.func @transform_2(%arg0: i32) -> (i32, i32) {
    %c0_i32 = arith.constant 0 : i32
    %c0_i32_0 = arith.constant 0 : i32
    %c0_i32_1 = arith.constant 0 : i32
    return %c0_i32, %c0_i32_0 : i32, i32
  }
  func.func @transform_3(%arg0: i32) -> (i32, i32) {
    %c0_i32 = arith.constant 0 : i32
    %c0_i32_0 = arith.constant 0 : i32
    %c0_i32_1 = arith.constant 0 : i32
    return %c0_i32, %c0_i32_0 : i32, i32
  }
  func.func @transform_4(%arg0: i32) -> (i32, i32) {
    %c0_i32 = arith.constant 0 : i32
    %c0_i32_0 = arith.constant 0 : i32
    %c0_i32_1 = arith.constant 0 : i32
    return %c0_i32, %c0_i32_0 : i32, i32
  }
  func.func @transform_5(%arg0: i32) -> (i32, i32) {
    %c0_i32 = arith.constant 0 : i32
    %c0_i32_0 = arith.constant 0 : i32
    %c0_i32_1 = arith.constant 0 : i32
    return %c0_i32, %c0_i32_0 : i32, i32
  }
  func.func @transform_6(%arg0: i32) -> (i32, i32) {
    %c0_i32 = arith.constant 0 : i32
    %c0_i32_0 = arith.constant 0 : i32
    %c0_i32_1 = arith.constant 0 : i32
    return %c0_i32, %c0_i32_0 : i32, i32
  }
  func.func @transform_7(%arg0: i32) -> (i32, i32) {
    %c0_i32 = arith.constant 0 : i32
    %c0_i32_0 = arith.constant 0 : i32
    %c0_i32_1 = arith.constant 0 : i32
    return %c0_i32, %c0_i32_0 : i32, i32
  }
  func.func @transform_8(%arg0: i32) -> (i32, i32) {
    %c0_i32 = arith.constant 0 : i32
    %c0_i32_0 = arith.constant 0 : i32
    %c0_i32_1 = arith.constant 0 : i32
    return %c0_i32, %c0_i32_0 : i32, i32
  }
  func.func @transform_9(%arg0: i32) -> (i32, i32) {
    %c0_i32 = arith.constant 0 : i32
    %c0_i32_0 = arith.constant 0 : i32
    return %arg0, %c0_i32 : i32, i32
  }
}

module attributes {stable_mosaic.version = 11 : i64} {
  func.func @pponn_kernel(%arg0: i32, %arg1: memref<8x64xf32, #tpu.memory_space<vmem>>, %arg2: memref<64x256xf32, #tpu.memory_space<vmem>>, %arg3: memref<1x256xf32, #tpu.memory_space<vmem>>, %arg4: memref<256x256xf32, #tpu.memory_space<vmem>>, %arg5: memref<1x256xf32, #tpu.memory_space<vmem>>, %arg6: memref<256x256xf32, #tpu.memory_space<vmem>>, %arg7: memref<1x256xf32, #tpu.memory_space<vmem>>, %arg8: memref<256x128xf32, #tpu.memory_space<vmem>>, %arg9: memref<1x128xf32, #tpu.memory_space<vmem>>, %arg10: memref<8x128xf32, #tpu.memory_space<vmem>>) attributes {dimension_semantics = [#tpu.dimension_semantics<parallel>], iteration_bounds = array<i64: 1>, scalar_prefetch = 0 : i64, scratch_operands = 0 : i64, tpu.core_type = #tpu.core_type<tc>, window_params = [{transform_indices = @transform_0, window_bounds = array<i64: 8, 64>}, {pipeline_mode = #tpu.pipeline_mode<synchronous>, transform_indices = @transform_1, window_bounds = array<i64: 64, 256>}, {pipeline_mode = #tpu.pipeline_mode<synchronous>, transform_indices = @transform_2, window_bounds = array<i64: 1, 256>}, {pipeline_mode = #tpu.pipeline_mode<synchronous>, transform_indices = @transform_3, window_bounds = array<i64: 256, 256>}, {pipeline_mode = #tpu.pipeline_mode<synchronous>, transform_indices = @transform_4, window_bounds = array<i64: 1, 256>}, {pipeline_mode = #tpu.pipeline_mode<synchronous>, transform_indices = @transform_5, window_bounds = array<i64: 256, 256>}, {pipeline_mode = #tpu.pipeline_mode<synchronous>, transform_indices = @transform_6, window_bounds = array<i64: 1, 256>}, {pipeline_mode = #tpu.pipeline_mode<synchronous>, transform_indices = @transform_7, window_bounds = array<i64: 256, 128>}, {pipeline_mode = #tpu.pipeline_mode<synchronous>, transform_indices = @transform_8, window_bounds = array<i64: 1, 128>}, {transform_indices = @transform_9, window_bounds = array<i64: 8, 128>}]} {
    %c0 = arith.constant 0 : index
    %c0_0 = arith.constant 0 : index
    %0 = vector.load %arg1[%c0, %c0_0] : memref<8x64xf32, #tpu.memory_space<vmem>>, vector<8x64xf32>
    %c0_1 = arith.constant 0 : index
    %c0_2 = arith.constant 0 : index
    %1 = vector.load %arg2[%c0_1, %c0_2] : memref<64x256xf32, #tpu.memory_space<vmem>>, vector<64x256xf32>
    %cst = arith.constant dense<0.000000e+00> : vector<8x256xf32>
    %2 = tpu.matmul %0, %1, %cst {dimension_numbers = #tpu.dot_dimension_numbers<[1], [0], [0], [1], [0, 0, 1, 1], [], []>} : vector<8x64xf32>, vector<64x256xf32>, vector<8x256xf32> -> vector<8x256xf32>
    %c0_3 = arith.constant 0 : index
    %c0_4 = arith.constant 0 : index
    %3 = vector.load %arg3[%c0_3, %c0_4] : memref<1x256xf32, #tpu.memory_space<vmem>>, vector<1x256xf32>
    %4 = vector.broadcast %3 : vector<1x256xf32> to vector<8x256xf32>
    %5 = arith.addf %2, %4 : vector<8x256xf32>
    %cst_5 = arith.constant 0.000000e+00 : f32
    %6 = vector.broadcast %cst_5 : f32 to vector<8x256xf32>
    %7 = arith.maximumf %5, %6 : vector<8x256xf32>
    %c0_6 = arith.constant 0 : index
    %c0_7 = arith.constant 0 : index
    %8 = vector.load %arg4[%c0_6, %c0_7] : memref<256x256xf32, #tpu.memory_space<vmem>>, vector<256x256xf32>
    %cst_8 = arith.constant dense<0.000000e+00> : vector<8x256xf32>
    %9 = tpu.matmul %7, %8, %cst_8 {dimension_numbers = #tpu.dot_dimension_numbers<[1], [0], [0], [1], [0, 0, 1, 1], [], []>} : vector<8x256xf32>, vector<256x256xf32>, vector<8x256xf32> -> vector<8x256xf32>
    %c0_9 = arith.constant 0 : index
    %c0_10 = arith.constant 0 : index
    %10 = vector.load %arg5[%c0_9, %c0_10] : memref<1x256xf32, #tpu.memory_space<vmem>>, vector<1x256xf32>
    %11 = vector.broadcast %10 : vector<1x256xf32> to vector<8x256xf32>
    %12 = arith.addf %9, %11 : vector<8x256xf32>
    %cst_11 = arith.constant 0.000000e+00 : f32
    %13 = vector.broadcast %cst_11 : f32 to vector<8x256xf32>
    %14 = arith.maximumf %12, %13 : vector<8x256xf32>
    %c0_12 = arith.constant 0 : index
    %c0_13 = arith.constant 0 : index
    %15 = vector.load %arg6[%c0_12, %c0_13] : memref<256x256xf32, #tpu.memory_space<vmem>>, vector<256x256xf32>
    %cst_14 = arith.constant dense<0.000000e+00> : vector<8x256xf32>
    %16 = tpu.matmul %14, %15, %cst_14 {dimension_numbers = #tpu.dot_dimension_numbers<[1], [0], [0], [1], [0, 0, 1, 1], [], []>} : vector<8x256xf32>, vector<256x256xf32>, vector<8x256xf32> -> vector<8x256xf32>
    %c0_15 = arith.constant 0 : index
    %c0_16 = arith.constant 0 : index
    %17 = vector.load %arg7[%c0_15, %c0_16] : memref<1x256xf32, #tpu.memory_space<vmem>>, vector<1x256xf32>
    %18 = vector.broadcast %17 : vector<1x256xf32> to vector<8x256xf32>
    %19 = arith.addf %16, %18 : vector<8x256xf32>
    %cst_17 = arith.constant 0.000000e+00 : f32
    %20 = vector.broadcast %cst_17 : f32 to vector<8x256xf32>
    %21 = arith.maximumf %19, %20 : vector<8x256xf32>
    %c0_18 = arith.constant 0 : index
    %c0_19 = arith.constant 0 : index
    %22 = vector.load %arg8[%c0_18, %c0_19] : memref<256x128xf32, #tpu.memory_space<vmem>>, vector<256x128xf32>
    %cst_20 = arith.constant dense<0.000000e+00> : vector<8x128xf32>
    %23 = tpu.matmul %21, %22, %cst_20 {dimension_numbers = #tpu.dot_dimension_numbers<[1], [0], [0], [1], [0, 0, 1, 1], [], []>} : vector<8x256xf32>, vector<256x128xf32>, vector<8x128xf32> -> vector<8x128xf32>
    %c0_21 = arith.constant 0 : index
    %c0_22 = arith.constant 0 : index
    %24 = vector.load %arg9[%c0_21, %c0_22] : memref<1x128xf32, #tpu.memory_space<vmem>>, vector<1x128xf32>
    %25 = vector.broadcast %24 : vector<1x128xf32> to vector<8x128xf32>
    %26 = arith.addf %23, %25 : vector<8x128xf32>
    %c0_23 = arith.constant 0 : index
    %c0_24 = arith.constant 0 : index
    %27 = vector.load %arg10[%c0_23, %c0_24] : memref<8x128xf32, #tpu.memory_space<vmem>>, vector<8x128xf32>
    tpu.vector_store %arg10[%c0_23, %c0_24], %26 {strides = array<i32>} : memref<8x128xf32, #tpu.memory_space<vmem>>, vector<8x128xf32>,
    return
  }
  func.func @transform_0(%arg0: i32) -> (i32, i32) {
    %c0_i32 = arith.constant 0 : i32
    %c0_i32_0 = arith.constant 0 : i32
    return %arg0, %c0_i32 : i32, i32
  }
  func.func @transform_1(%arg0: i32) -> (i32, i32) {
    %c0_i32 = arith.constant 0 : i32
    %c0_i32_0 = arith.constant 0 : i32
    %c0_i32_1 = arith.constant 0 : i32
    return %c0_i32, %c0_i32_0 : i32, i32
  }
  func.func @transform_2(%arg0: i32) -> (i32, i32) {
    %c0_i32 = arith.constant 0 : i32
    %c0_i32_0 = arith.constant 0 : i32
    %c0_i32_1 = arith.constant 0 : i32
    return %c0_i32, %c0_i32_0 : i32, i32
  }
  func.func @transform_3(%arg0: i32) -> (i32, i32) {
    %c0_i32 = arith.constant 0 : i32
    %c0_i32_0 = arith.constant 0 : i32
    %c0_i32_1 = arith.constant 0 : i32
    return %c0_i32, %c0_i32_0 : i32, i32
  }
  func.func @transform_4(%arg0: i32) -> (i32, i32) {
    %c0_i32 = arith.constant 0 : i32
    %c0_i32_0 = arith.constant 0 : i32
    %c0_i32_1 = arith.constant 0 : i32
    return %c0_i32, %c0_i32_0 : i32, i32
  }
  func.func @transform_5(%arg0: i32) -> (i32, i32) {
    %c0_i32 = arith.constant 0 : i32
    %c0_i32_0 = arith.constant 0 : i32
    %c0_i32_1 = arith.constant 0 : i32
    return %c0_i32, %c0_i32_0 : i32, i32
  }
  func.func @transform_6(%arg0: i32) -> (i32, i32) {
    %c0_i32 = arith.constant 0 : i32
    %c0_i32_0 = arith.constant 0 : i32
    %c0_i32_1 = arith.constant 0 : i32
    return %c0_i32, %c0_i32_0 : i32, i32
  }
  func.func @transform_7(%arg0: i32) -> (i32, i32) {
    %c0_i32 = arith.constant 0 : i32
    %c0_i32_0 = arith.constant 0 : i32
    %c0_i32_1 = arith.constant 0 : i32
    return %c0_i32, %c0_i32_0 : i32, i32
  }
  func.func @transform_8(%arg0: i32) -> (i32, i32) {
    %c0_i32 = arith.constant 0 : i32
    %c0_i32_0 = arith.constant 0 : i32
    %c0_i32_1 = arith.constant 0 : i32
    return %c0_i32, %c0_i32_0 : i32, i32
  }
  func.func @transform_9(%arg0: i32) -> (i32, i32) {
    %c0_i32 = arith.constant 0 : i32
    %c0_i32_0 = arith.constant 0 : i32
    return %arg0, %c0_i32 : i32, i32
  }
}

</mosaic_0001>

<bundles_post_ra>
// kernel: tpu_custom_call.1
= control target key start
LH: loop header
LB: loop body
LE: loop exit
PB: predicated region body
PF: predicated region fallthrough
CT: control target
= control target key end

     0   :  { %14 = vsyncpa [#allocation3], 0  ;;  %s885_s0 = inlined_call_operand.hbm [shape: f32[8,64], index: 0, kind: input, shape index: {}]   ;;  %s886_s1 = inlined_call_operand.hbm [shape: f32[64,256], index: 1, kind: input, shape index: {}]   ;;  %s887_s2 = inlined_call_operand.hbm [shape: f32[1,256], index: 2, kind: input, shape index: {}]   ;;  %s888_s3 = inlined_call_operand.hbm [shape: f32[256,256], index: 3, kind: input, shape index: {}]   ;;  %s889_s4 = inlined_call_operand.vmem [shape: f32[1,256], index: 4, kind: input, shape index: {}]   ;;  %s890_s5 = inlined_call_operand.hbm [shape: f32[256,256], index: 5, kind: input, shape index: {}]   ;;  %s891_s6 = inlined_call_operand.vmem [shape: f32[1,256], index: 6, kind: input, shape index: {}]   ;;  %s892_s7 = inlined_call_operand.hbm [shape: f32[256,128], index: 7, kind: input, shape index: {}]   ;;  %s893_s8 = inlined_call_operand.vmem [shape: f32[1,128], index: 8, kind: input, shape index: {}]   ;;  %s894_s9 = inlined_call_operand.hbm [shape: f32[8,128], index: 9, kind: output, shape index: {}]  }
   0x1   :  { %15 = vsyncpa [#allocation6], 0 }
   0x2   :  { %16 = vsyncpa [#allocation9], 0 }
   0x3   :  { %17 = vsyncpa [#allocation12], 0  ;;  %s34_s11 = sshll.u32 %s886_s1, 4  ;;  %s35_s11 = int_to_ptr.hbm [resolvable:$true] %s34_s11 }
   0x4   :  { %18 = vsyncpa [#allocation4], 0  ;;  %s785_s12 = smov [#allocation5]   ;;  %s58_s16 = sshll.u32 %s888_s3, 4  ;;  %s59_s16 = int_to_ptr.hbm [resolvable:$true] %s58_s16 }
   0x5   :  { %s36_s13 = sshll.u32 %s785_s12, 4  ;;  %s786_s17 = smov 256   ;;  %s37_s13 = int_to_ptr.vmem [resolvable:$true] %s36_s13 }
   0x6   :  { %s787_s18 = smov 16   ;;  %s788_s19 = smov [#allocation8]  }
   0x7   :  { %42 = dma.hbm_to_vmem [thread:$0]  %s35_s11, 2048, %s37_s13, [#allocation6], %s786_s17, %s786_s17, %s787_s18  }
   0x8   :  { %s60_s20 = sshll.u32 %s788_s19, 4  ;;  %s24_s22 = sshll.u32 %s885_s0, 4  ;;  %s61_s20 = int_to_ptr.vmem [resolvable:$true] %s60_s20  ;;  %s25_s22 = int_to_ptr.hbm [resolvable:$true] %s24_s22 }
   0x9   :  { %66 = dma.hbm_to_vmem [thread:$0]  %s59_s16, 8192, %s61_s20, [#allocation9], %s786_s17, %s786_s17, %s787_s18  }
   0xa   :  { %s48_s24 = sshll.u32 %s887_s2, 4  ;;  %s789_s25 = smov [#allocation2]   ;;  %s49_s24 = int_to_ptr.hbm [resolvable:$true] %s48_s24 }
   0xb   :  { %s26_s26 = sshll.u32 %s789_s25, 4  ;;  %s790_s27 = smov [#allocation7]   ;;  %s27_s26 = int_to_ptr.vmem [resolvable:$true] %s26_s26 }
   0xc   :  { %29 = dma.hbm_to_vmem [thread:$0]  %s25_s22, 128, %s27_s26, [#allocation3]  }
   0xd   :  { %s50_s28 = sshll.u32 %s790_s27, 4  ;;  %s73_s0 = sshll.u32 %s890_s5, 4  ;;  %s51_s28 = int_to_ptr.vmem [resolvable:$true] %s50_s28  ;;  %s74_s0 = int_to_ptr.hbm [resolvable:$true] %s73_s0 }
   0xe   :  { %53 = dma.hbm_to_vmem [thread:$0]  %s49_s24, 32, %s51_s28, [#allocation6]  }
   0xf   :  { %s88_s12 = sshll.u32 %s892_s7, 4  ;;  %s791_s13 = smov [#allocation10]   ;;  %s89_s12 = int_to_ptr.hbm [resolvable:$true] %s88_s12 }
  0x10   :  { %s75_s2 = sshll.u32 %s791_s13, 4  ;;  %s792_s14 = smov [#allocation11]   ;;  %s76_s2 = int_to_ptr.vmem [resolvable:$true] %s75_s2 }
  0x11   :  { %81 = dma.hbm_to_vmem [thread:$0]  %s74_s0, 8192, %s76_s2, [#allocation9], %s786_s17, %s786_s17, %s787_s18  }
  0x12   :  { %s90_s15 = sshll.u32 %s792_s14, 4  ;;  %s793_s16 = smov 128   ;;  %s91_s15 = int_to_ptr.vmem [resolvable:$true] %s90_s15 }
  0x13   :  { %s794_s5 = smov 8  }
  0x14   :  { %96 = dma.hbm_to_vmem [thread:$0]  %s89_s12, 4096, %s91_s15, [#allocation12], %s793_s16, %s793_s16, %s794_s5  }
  0x15   :  { %775 = dma.done.wait [#allocation3], 128  }
  0x16   :  { %776 = vsyncadd [#allocation3], 4294967168 }
  0x17   :  { %777 = dma.done.wait [#allocation6], 2080  }
  0x18   :  { %778 = vsyncadd [#allocation6], 4294965216 }
  0x19   :  { %779 = dma.done.wait [#allocation9], 16384  }
  0x1a   :  { %780 = vsyncadd [#allocation9], 4294950912 }
  0x1b   :  { %781 = dma.done.wait [#allocation12], 4096  }
  0x1c   :  { %782 = vsyncadd [#allocation12], 4294963200  ;;  %v138_v0 = vld [vmem:[#allocation5 + $0x70] sm:$0xff]  ;;  %v136_v1 = vld [vmem:[#allocation5 + $0x60] sm:$0xff]  ;;  %vm146_vm0 = vcmask 523264   ;;  %s580_s3 = sshll.u32 %s894_s9, 4  ;;  %s581_s3 = int_to_ptr.hbm [resolvable:$true] %s580_s3 }
  0x1d   :  { %v139_v2 = vld [vmem:[#allocation5 + $0x78] sm:$0xff]  ;;  %158 = vmatpush.msra.mxu0 %v138_v0  ;;  %v137_v3 = vld [vmem:[#allocation5 + $0x68] sm:$0xff]  ;;  %v134_v4 = vld [vmem:[#allocation5 + $0x50] sm:$0xff] }
  0x1e   :  { %178 = vmatpush.msra.mxu1 %v139_v2  ;;  %v135_v5 = vld [vmem:[#allocation5 + $0x58] sm:$0xff]  ;;  %v132_v6 = vld [vmem:[#allocation5 + $0x40] sm:$0xff]  ;;  %v133_v7 = vld [vmem:[#allocation5 + $0x48] sm:$0xff] }
  0x1f   :  { %159 = vmatpush.msra.mxu0 %v136_v1  ;;  %v130_v8 = vld [vmem:[#allocation5 + $0x30] sm:$0xff]  ;;  %v131_v10 = vld [vmem:[#allocation5 + $0x38] sm:$0xff]  ;;  %v220_v11 = vld [vmem:[#allocation8 + $0xe0] sm:$0xff] }
  0x20   :  { %179 = vmatpush.msra.mxu1 %v137_v3  ;;  %v222_v9 = vld [vmem:[#allocation8 + $0xf0] sm:$0xff]  ;;  %v128_v14 = vld [vmem:[#allocation5 + $0x20] sm:$0xff]  ;;  %v129_v15 = vld [vmem:[#allocation5 + $0x28] sm:$0xff] }
  0x21   :  { %160 = vmatpush.msra.mxu0 %v134_v4  ;;  %262 = vmatpush.msra.mxu2 %v222_v9  ;;  %v254_v12 = vld [vmem:[#allocation8 + $0x1f0] sm:$0xff]  ;;  %v252_v16 = vld [vmem:[#allocation8 + $0x1e0] sm:$0xff]  ;;  %v223_v26 = vld [vmem:[#allocation8 + $0xf8] sm:$0xff] }
  0x22   :  { %180 = vmatpush.msra.mxu1 %v135_v5  ;;  %v218_v13 = vld [vmem:[#allocation8 + $0xd0] sm:$0xff]  ;;  %282 = vmatpush.msra.mxu3 %v254_v12  ;;  %v216_v17 = vld [vmem:[#allocation8 + $0xc0] sm:$0xff]  ;;  %v255_v27 = vld [vmem:[#allocation8 + $0x1f8] sm:$0xff] }
  0x23   :  { %161 = vmatpush.msra.mxu0 %v132_v6  ;;  %263 = vmatpush.msra.mxu2 %v220_v11  ;;  %v250_v18 = vld [vmem:[#allocation8 + $0x1d0] sm:$0xff]  ;;  %v248_v22 = vld [vmem:[#allocation8 + $0x1c0] sm:$0xff]  ;;  %v221_v30 = vld [vmem:[#allocation8 + $0xe8] sm:$0xff] }
  0x24   :  { %181 = vmatpush.msra.mxu1 %v133_v7  ;;  %v126_v19 = vld [vmem:[#allocation5 + $0x10] sm:$0xff]  ;;  %v127_v20 = vld [vmem:[#allocation5 + $0x18] sm:$0xff]  ;;  %283 = vmatpush.msra.mxu3 %v252_v16  ;;  %v124_v23 = vld [vmem:[#allocation5] sm:$0xff] }
  0x25   :  { %162 = vmatpush.msra.mxu0 %v130_v8  ;;  %264 = vmatpush.msra.mxu2 %v218_v13  ;;  %v214_v21 = vld [vmem:[#allocation8 + $0xb0] sm:$0xff]  ;;  %v125_v24 = vld [vmem:[#allocation5 + $0x8] sm:$0xff]  ;;  %v219_v34 = vld [vmem:[#allocation8 + $0xd8] sm:$0xff] }
  0x26   :  { %182 = vmatpush.msra.mxu1 %v131_v10  ;;  %284 = vmatpush.msra.mxu3 %v250_v18  ;;  %v123_v25 = vld [vmem:[#allocation2] sm:$0xff]  ;;  %v212_v28 = vld [vmem:[#allocation8 + $0xa0] sm:$0xff]  ;;  %v253_v31 = vld [vmem:[#allocation8 + $0x1e8] sm:$0xff] }
  0x27   :  { %163 = vmatpush.msra.mxu0 %v128_v14  ;;  %265 = vmatpush.msra.mxu2 %v216_v17  ;;  %v246_v29 = vld [vmem:[#allocation8 + $0x1b0] sm:$0xff]  ;;  %v244_v33 = vld [vmem:[#allocation8 + $0x1a0] sm:$0xff]  ;;  %v251_v35 = vld [vmem:[#allocation8 + $0x1d8] sm:$0xff] }
  0x28   :  { %183 = vmatpush.msra.mxu1 %v129_v15  ;;  %285 = vmatpush.msra.mxu3 %v248_v22  ;;  %v210_v32 = vld [vmem:[#allocation8 + $0x90] sm:$0xff]  ;;  %v208_v36 = vld [vmem:[#allocation8 + $0x80] sm:$0xff]  ;;  %v217_v38 = vld [vmem:[#allocation8 + $0xc8] sm:$0xff] }
  0x29   :  { %164 = vmatpush.msra.mxu0 %v126_v19  ;;  %266 = vmatpush.msra.mxu2 %v214_v21  ;;  %v242_v37 = vld [vmem:[#allocation8 + $0x190] sm:$0xff]  ;;  %v249_v39 = vld [vmem:[#allocation8 + $0x1c8] sm:$0xff]  ;;  %v240_v41 = vld [vmem:[#allocation8 + $0x180] sm:$0xff] }
  0x2a   :  { %184 = vmatpush.msra.mxu1 %v127_v20  ;;  %286 = vmatpush.msra.mxu3 %v246_v29  ;;  %v206_v40 = vld [vmem:[#allocation8 + $0x70] sm:$0xff]  ;;  %v215_v42 = vld [vmem:[#allocation8 + $0xb8] sm:$0xff]  ;;  %v204_v44 = vld [vmem:[#allocation8 + $0x60] sm:$0xff] }
  0x2b   :  { %165 = vmatpush.msra.mxu0 %v124_v23  ;;  %267 = vmatpush.msra.mxu2 %v212_v28  ;;  %v247_v43 = vld [vmem:[#allocation8 + $0x1b8] sm:$0xff]  ;;  %v238_v45 = vld [vmem:[#allocation8 + $0x170] sm:$0xff]  ;;  %v213_v46 = vld [vmem:[#allocation8 + $0xa8] sm:$0xff] }
  0x2c   :  { %185 = vmatpush.msra.mxu1 %v125_v24  ;;  %593 = vmatmul.msk.f32.vlgmr.msra.gmra.mxu0 %vm146_vm0, %v123_v25  ;;  %v245_v47 = vld [vmem:[#allocation8 + $0x1a8] sm:$0xff]  ;;  %v202_v48 = vld [vmem:[#allocation8 + $0x50] sm:$0xff]  ;;  %v236_v49 = vld [vmem:[#allocation8 + $0x160] sm:$0xff] }
  0x2d   :  { %594 = vmatmul.msk.f32.vlgmr.msra.gmra.mxu1 %vm146_vm0, %v123_v25  ;;  %302 = vmatpush.msrb.mxu0 %v223_v26  ;;  %v211_v50 = vld [vmem:[#allocation8 + $0x98] sm:$0xff]  ;;  %v200_v52 = vld [vmem:[#allocation8 + $0x40] sm:$0xff]  ;;  %v234_v53 = vld [vmem:[#allocation8 + $0x150] sm:$0xff] }
  0x2e   :  { %322 = vmatpush.msrb.mxu1 %v255_v27  ;;  %268 = vmatpush.msra.mxu2 %v210_v32  ;;  %v243_v51 = vld [vmem:[#allocation8 + $0x198] sm:$0xff]  ;;  %v209_v54 = vld [vmem:[#allocation8 + $0x88] sm:$0xff]  ;;  %v198_v56 = vld [vmem:[#allocation8 + $0x30] sm:$0xff] }
  0x2f   :  { %303 = vmatpush.msrb.mxu0 %v221_v30  ;;  %287 = vmatpush.msra.mxu3 %v244_v33  ;;  %v241_v55 = vld [vmem:[#allocation8 + $0x188] sm:$0xff]  ;;  %v232_v57 = vld [vmem:[#allocation8 + $0x140] sm:$0xff]  ;;  %v207_v58 = vld [vmem:[#allocation8 + $0x78] sm:$0xff] }
  0x30   :  { %323 = vmatpush.msrb.mxu1 %v253_v31  ;;  %269 = vmatpush.msra.mxu2 %v208_v36  ;;  %v239_v59 = vld [vmem:[#allocation8 + $0x178] sm:$0xff]  ;;  %v205_v60 = vld [vmem:[#allocation8 + $0x68] sm:$0xff]  ;;  %v196_v3 = vld [vmem:[#allocation8 + $0x20] sm:$0xff] }
  0x31   :  { %304 = vmatpush.msrb.mxu0 %v219_v34  ;;  %288 = vmatpush.msra.mxu3 %v242_v37  ;;  %v237_v61 = vld [vmem:[#allocation8 + $0x168] sm:$0xff]  ;;  %v203_v62 = vld [vmem:[#allocation8 + $0x58] sm:$0xff]  ;;  %v230_v4 = vld [vmem:[#allocation8 + $0x130] sm:$0xff] }
  0x32   :  { %324 = vmatpush.msrb.mxu1 %v251_v35  ;;  %270 = vmatpush.msra.mxu2 %v206_v40  ;;  %v235_v63 = vld [vmem:[#allocation8 + $0x158] sm:$0xff]  ;;  %v201_v0 = vld [vmem:[#allocation8 + $0x48] sm:$0xff]  ;;  %v194_v7 = vld [vmem:[#allocation8 + $0x10] sm:$0xff] }
  0x33   :  { %305 = vmatpush.msrb.mxu0 %v217_v38  ;;  %289 = vmatpush.msra.mxu3 %v240_v41  ;;  %v233_v1 = vld [vmem:[#allocation8 + $0x148] sm:$0xff]  ;;  %v199_v2 = vld [vmem:[#allocation8 + $0x38] sm:$0xff]  ;;  %v228_v8 = vld [vmem:[#allocation8 + $0x120] sm:$0xff] }
  0x34   :  { %325 = vmatpush.msrb.mxu1 %v249_v39  ;;  %271 = vmatpush.msra.mxu2 %v204_v44  ;;  %v197_v5 = vld [vmem:[#allocation8 + $0x28] sm:$0xff]  ;;  %v231_v6 = vld [vmem:[#allocation8 + $0x138] sm:$0xff]  ;;  %v192_v11 = vld [vmem:[#allocation8] sm:$0xff] }
  0x35   :  { %306 = vmatpush.msrb.mxu0 %v215_v42  ;;  %290 = vmatpush.msra.mxu3 %v238_v45  ;;  %v195_v9 = vld [vmem:[#allocation8 + $0x18] sm:$0xff]  ;;  %v229_v10 = vld [vmem:[#allocation8 + $0x128] sm:$0xff]  ;;  %v226_v12 = vld [vmem:[#allocation8 + $0x110] sm:$0xff] }
  0x36   :  { %326 = vmatpush.msrb.mxu1 %v247_v43  ;;  %272 = vmatpush.msra.mxu2 %v202_v48  ;;  %v193_v13 = vld [vmem:[#allocation8 + $0x8] sm:$0xff]  ;;  %v227_v14 = vld [vmem:[#allocation8 + $0x118] sm:$0xff]  ;;  %v224_v15 = vld [vmem:[#allocation8 + $0x100] sm:$0xff] }
  0x37   :  { %307 = vmatpush.msrb.mxu0 %v213_v46  ;;  %291 = vmatpush.msra.mxu3 %v236_v49  ;;  %v225_v16 = vld [vmem:[#allocation8 + $0x108] sm:$0xff]  ;;  %v406_v17 = vld [vmem:[#allocation10 + $0x1f0] sm:$0xff]  ;;  %v407_v18 = vld [vmem:[#allocation10 + $0x1f8] sm:$0xff] }
  0x38   :  { %327 = vmatpush.msrb.mxu1 %v245_v47  ;;  %273 = vmatpush.msra.mxu2 %v200_v52  ;;  %v404_v19 = vld [vmem:[#allocation10 + $0x1e0] sm:$0xff]  ;;  %v405_v20 = vld [vmem:[#allocation10 + $0x1e8] sm:$0xff]  ;;  %v402_v21 = vld [vmem:[#allocation10 + $0x1d0] sm:$0xff] }
  0x39   :  { %308 = vmatpush.msrb.mxu0 %v211_v50  ;;  %292 = vmatpush.msra.mxu3 %v234_v53  ;;  %v374_v22 = vld [vmem:[#allocation10 + $0xf0] sm:$0xff]  ;;  %v375_v23 = vld [vmem:[#allocation10 + $0xf8] sm:$0xff]  ;;  %v372_v25 = vld [vmem:[#allocation10 + $0xe0] sm:$0xff] }
  0x3a   :  { %328 = vmatpush.msrb.mxu1 %v243_v51  ;;  %274 = vmatpush.msra.mxu2 %v198_v56  ;;  %v403_v24 = vld [vmem:[#allocation10 + $0x1d8] sm:$0xff]  ;;  %v400_v26 = vld [vmem:[#allocation10 + $0x1c0] sm:$0xff]  ;;  %v373_v27 = vld [vmem:[#allocation10 + $0xe8] sm:$0xff] }
  0x3b   :  { %309 = vmatpush.msrb.mxu0 %v209_v54  ;;  %293 = vmatpush.msra.mxu3 %v232_v57  ;;  %v370_v28 = vld [vmem:[#allocation10 + $0xd0] sm:$0xff]  ;;  %v401_v29 = vld [vmem:[#allocation10 + $0x1c8] sm:$0xff]  ;;  %v371_v30 = vld [vmem:[#allocation10 + $0xd8] sm:$0xff] }
  0x3c   :  { %329 = vmatpush.msrb.mxu1 %v241_v55  ;;  %275 = vmatpush.msra.mxu2 %v196_v3  ;;  %v398_v31 = vld [vmem:[#allocation10 + $0x1b0] sm:$0xff]  ;;  %v368_v32 = vld [vmem:[#allocation10 + $0xc0] sm:$0xff]  ;;  %v399_v33 = vld [vmem:[#allocation10 + $0x1b8] sm:$0xff] }
  0x3d   :  { %310 = vmatpush.msrb.mxu0 %v207_v58  ;;  %294 = vmatpush.msra.mxu3 %v230_v4  ;;  %v369_v34 = vld [vmem:[#allocation10 + $0xc8] sm:$0xff]  ;;  %v396_v35 = vld [vmem:[#allocation10 + $0x1a0] sm:$0xff]  ;;  %v366_v36 = vld [vmem:[#allocation10 + $0xb0] sm:$0xff] }
  0x3e   :  { %330 = vmatpush.msrb.mxu1 %v239_v59  ;;  %276 = vmatpush.msra.mxu2 %v194_v7  ;;  %v397_v37 = vld [vmem:[#allocation10 + $0x1a8] sm:$0xff]  ;;  %v367_v38 = vld [vmem:[#allocation10 + $0xb8] sm:$0xff]  ;;  %v394_v39 = vld [vmem:[#allocation10 + $0x190] sm:$0xff] }
  0x3f   :  { %311 = vmatpush.msrb.mxu0 %v205_v60  ;;  %295 = vmatpush.msra.mxu3 %v228_v8  ;;  %v364_v40 = vld [vmem:[#allocation10 + $0xa0] sm:$0xff]  ;;  %v395_v41 = vld [vmem:[#allocation10 + $0x198] sm:$0xff]  ;;  %v365_v42 = vld [vmem:[#allocation10 + $0xa8] sm:$0xff] }
  0x40   :  { %331 = vmatpush.msrb.mxu1 %v237_v61  ;;  %277 = vmatpush.msra.mxu2 %v192_v11  ;;  %v392_v43 = vld [vmem:[#allocation10 + $0x180] sm:$0xff]  ;;  %v362_v44 = vld [vmem:[#allocation10 + $0x90] sm:$0xff]  ;;  %v393_v45 = vld [vmem:[#allocation10 + $0x188] sm:$0xff] }
  0x41   :  { %312 = vmatpush.msrb.mxu0 %v203_v62  ;;  %296 = vmatpush.msra.mxu3 %v226_v12  ;;  %v363_v46 = vld [vmem:[#allocation10 + $0x98] sm:$0xff]  ;;  %v390_v47 = vld [vmem:[#allocation10 + $0x170] sm:$0xff]  ;;  %v360_v48 = vld [vmem:[#allocation10 + $0x80] sm:$0xff] }
  0x42   :  { %332 = vmatpush.msrb.mxu1 %v235_v63  ;;  %414 = vmatpush.msrb.mxu2 %v374_v22  ;;  %v391_v49 = vld [vmem:[#allocation10 + $0x178] sm:$0xff]  ;;  %v361_v50 = vld [vmem:[#allocation10 + $0x88] sm:$0xff]  ;;  %v388_v51 = vld [vmem:[#allocation10 + $0x160] sm:$0xff] }
  0x43   :  { %313 = vmatpush.msrb.mxu0 %v201_v0  ;;  %297 = vmatpush.msra.mxu3 %v224_v15  ;;  %v358_v52 = vld [vmem:[#allocation10 + $0x70] sm:$0xff]  ;;  %v389_v53 = vld [vmem:[#allocation10 + $0x168] sm:$0xff]  ;;  %v359_v54 = vld [vmem:[#allocation10 + $0x78] sm:$0xff] }
  0x44   :  { %333 = vmatpush.msrb.mxu1 %v233_v1  ;;  %415 = vmatpush.msrb.mxu2 %v372_v25  ;;  %v386_v55 = vld [vmem:[#allocation10 + $0x150] sm:$0xff]  ;;  %v387_v56 = vld [vmem:[#allocation10 + $0x158] sm:$0xff]  ;;  %v384_v58 = vld [vmem:[#allocation10 + $0x140] sm:$0xff] }
  0x45   :  { %314 = vmatpush.msrb.mxu0 %v199_v2  ;;  %434 = vmatpush.msrb.mxu3 %v406_v17  ;;  %v140_v57 = vld [vmem:[#allocation7] sm:$0x3]  ;;  %v385_v59 = vld [vmem:[#allocation10 + $0x148] sm:$0xff]  ;;  %v356_v4 = vld [vmem:[#allocation10 + $0x60] sm:$0xff] }
  0x46   :  { %334 = vmatpush.msrb.mxu1 %v231_v6  ;;  %416 = vmatpush.msrb.mxu2 %v370_v28  ;;  %v142_v60 = vperm.slane %v140_v57, 0  ;;  %v143_v61 = vperm.slane %v140_v57, 1  ;;  %v357_v6 = vld [vmem:[#allocation10 + $0x68] sm:$0xff]  ;;  %v383_v7 = vld [vmem:[#allocation10 + $0x138] sm:$0xff]  ;;  %v354_v8 = vld [vmem:[#allocation10 + $0x50] sm:$0xff] }
  0x47   :  { %315 = vmatpush.msrb.mxu0 %v197_v5  ;;  %435 = vmatpush.msrb.mxu3 %v404_v19  ;;  %v382_v5 = vld [vmem:[#allocation10 + $0x130] sm:$0xff]  ;;  %v381_v11 = vld [vmem:[#allocation10 + $0x128] sm:$0xff]  ;;  %v352_v12 = vld [vmem:[#allocation10 + $0x40] sm:$0xff] }
  0x48   :  { %335 = vmatpush.msrb.mxu1 %v229_v10  ;;  %417 = vmatpush.msrb.mxu2 %v368_v32  ;;  %v355_v10 = vld [vmem:[#allocation10 + $0x58] sm:$0xff]  ;;  %v376_v17 = vld [vmem:[#allocation10 + $0x100] sm:$0xff]  ;;  %v377_v19 = vld [vmem:[#allocation10 + $0x108] sm:$0xff] }
  0x49   :  { %316 = vmatpush.msrb.mxu0 %v195_v9  ;;  %436 = vmatpush.msrb.mxu3 %v402_v21  ;;  %v380_v9 = vld [vmem:[#allocation10 + $0x120] sm:$0xff]  ;;  %v379_v15 = vld [vmem:[#allocation10 + $0x118] sm:$0xff]  ;;  %v349_v21 = vld [vmem:[#allocation10 + $0x28] sm:$0xff] }
  0x4a   :  { %336 = vmatpush.msrb.mxu1 %v227_v14  ;;  %418 = vmatpush.msrb.mxu2 %v366_v36  ;;  %v353_v14 = vld [vmem:[#allocation10 + $0x48] sm:$0xff]  ;;  %v346_v22 = vld [vmem:[#allocation10 + $0x10] sm:$0xff]  ;;  %v511_v28 = vld [vmem:[#allocation11 + $0x78] sm:$0xff] }
  0x4b   :  { %317 = vmatpush.msrb.mxu0 %v193_v13  ;;  %437 = vmatpush.msrb.mxu3 %v400_v26  ;;  %v378_v13 = vld [vmem:[#allocation10 + $0x110] sm:$0xff]  ;;  %v345_v25 = vld [vmem:[#allocation10 + $0x8] sm:$0xff]  ;;  %v527_v26 = vld [vmem:[#allocation11 + $0xf8] sm:$0xff] }
  0x4c   :  { %337 = vmatpush.msrb.mxu1 %v225_v16  ;;  %419 = vmatpush.msrb.mxu2 %v364_v40  ;;  %v350_v16 = vld [vmem:[#allocation10 + $0x30] sm:$0xff]  ;;  %v524_v32 = vld [vmem:[#allocation11 + $0xe0] sm:$0xff]  ;;  %v517_v57 = vld [vmem:[#allocation11 + $0xa8] sm:$0xff] }
  0x4d   :  { %454 = vmatpush.msra.mxu0 %v375_v23  ;;  %438 = vmatpush.msrb.mxu3 %v398_v31  ;;  %v347_v23 = vld [vmem:[#allocation10 + $0x18] sm:$0xff]  ;;  %v509_v31 = vld [vmem:[#allocation11 + $0x68] sm:$0xff]  ;;  %v522_v36 = vld [vmem:[#allocation11 + $0xd0] sm:$0xff] }
  0x4e   :  { %474 = vmatpush.msra.mxu1 %v407_v18  ;;  %420 = vmatpush.msrb.mxu2 %v362_v44  ;;  %v351_v18 = vld [vmem:[#allocation10 + $0x38] sm:$0xff]  ;;  %v256_v40 = vld [vmem:[%s889_s4] sm:$0x3] }
  0x4f   :  { %455 = vmatpush.msra.mxu0 %v373_v27  ;;  %439 = vmatpush.msrb.mxu3 %v396_v35  ;;  %v526_v27 = vld [vmem:[#allocation11 + $0xf0] sm:$0xff]  ;;  %v507_v35 = vld [vmem:[#allocation11 + $0x58] sm:$0xff] }
  0x50   :  { %475 = vmatpush.msra.mxu1 %v405_v20  ;;  %421 = vmatpush.msrb.mxu2 %v360_v48  ;;  %v348_v20 = vld [vmem:[#allocation10 + $0x20] sm:$0xff] }
  0x51   :  { %456 = vmatpush.msra.mxu0 %v371_v30  ;;  %440 = vmatpush.msrb.mxu3 %v394_v39  ;;  %v525_v30 = vld [vmem:[#allocation11 + $0xe8] sm:$0xff]  ;;  %v520_v39 = vld [vmem:[#allocation11 + $0xc0] sm:$0xff] }
  0x52   :  { %476 = vmatpush.msra.mxu1 %v403_v24  ;;  %422 = vmatpush.msrb.mxu2 %v358_v52  ;;  %v344_v24 = vld [vmem:[#allocation10] sm:$0xff] }
  0x53   :  { %457 = vmatpush.msra.mxu0 %v369_v34  ;;  %441 = vmatpush.msrb.mxu3 %v392_v43  ;;  %v523_v34 = vld [vmem:[#allocation11 + $0xd8] sm:$0xff] }
  0x54   :  { %477 = vmatpush.msra.mxu1 %v401_v29  ;;  %423 = vmatpush.msrb.mxu2 %v356_v4  ;;  %v510_v29 = vld [vmem:[#allocation11 + $0x70] sm:$0xff] }
  0x55   :  { %458 = vmatpush.msra.mxu0 %v367_v38  ;;  %442 = vmatpush.msrb.mxu3 %v390_v47  ;;  %v521_v38 = vld [vmem:[#allocation11 + $0xc8] sm:$0xff]  ;;  %v258_v47 = vperm.slane %v256_v40, 0  ;;  %v498_v4 = vld [vmem:[#allocation11 + $0x10] sm:$0xff] }
  0x56   :  { %478 = vmatpush.msra.mxu1 %v399_v33  ;;  %424 = vmatpush.msrb.mxu2 %v354_v8  ;;  %v508_v33 = vld [vmem:[#allocation11 + $0x60] sm:$0xff] }
  0x57   :  { %459 = vmatpush.msra.mxu0 %v365_v42  ;;  %443 = vmatpush.msrb.mxu3 %v388_v51  ;;  %v259_v42 = vperm.slane %v256_v40, 1 }
  0x58   :  { %479 = vmatpush.msra.mxu1 %v397_v37  ;;  %425 = vmatpush.msrb.mxu2 %v352_v12  ;;  %v506_v37 = vld [vmem:[#allocation11 + $0x50] sm:$0xff] }
  0x59   :  { %460 = vmatpush.msra.mxu0 %v363_v46  ;;  %444 = vmatpush.msrb.mxu3 %v386_v55  ;;  %v518_v55 = vld [vmem:[#allocation11 + $0xb0] sm:$0xff] }
  0x5a   :  { %480 = vmatpush.msra.mxu1 %v395_v41  ;;  %426 = vmatpush.msrb.mxu2 %v350_v16  ;;  %v519_v41 = vld [vmem:[#allocation11 + $0xb8] sm:$0xff] }
  0x5b   :  { %461 = vmatpush.msra.mxu0 %v361_v50  ;;  %445 = vmatpush.msrb.mxu3 %v384_v58  ;;  %v503_v58 = vld [vmem:[#allocation11 + $0x38] sm:$0xff] }
  0x5c   :  { %481 = vmatpush.msra.mxu1 %v393_v45  ;;  %427 = vmatpush.msrb.mxu2 %v348_v20  ;;  %v606_v20 = vld [vmem:[%s893_s8] ss:$0 sm:$0xff] }
  0x5d   :  { %462 = vmatpush.msra.mxu0 %v359_v54  ;;  %446 = vmatpush.msrb.mxu3 %v382_v5  ;;  %v505_v54 = vld [vmem:[#allocation11 + $0x48] sm:$0xff] }
  0x5e   :  { %482 = vmatpush.msra.mxu1 %v391_v49  ;;  %428 = vmatpush.msrb.mxu2 %v346_v22  ;;  %v497_v5 = vld [vmem:[#allocation11 + $0x8] sm:$0xff] }
  0x5f   :  { %463 = vmatpush.msra.mxu0 %v357_v6  ;;  %447 = vmatpush.msrb.mxu3 %v380_v9  ;;  %v496_v6 = vld [vmem:[#allocation11] sm:$0xff] }
  0x60   :  { %483 = vmatpush.msra.mxu1 %v389_v53  ;;  %429 = vmatpush.msrb.mxu2 %v344_v24 }
  0x61   :  { %464 = vmatpush.msra.mxu0 %v355_v10  ;;  %448 = vmatpush.msrb.mxu3 %v378_v13 }
  0x62   :  { %484 = vmatpush.msra.mxu1 %v387_v56  ;;  %v504_v56 = vld [vmem:[#allocation11 + $0x40] sm:$0xff] }
  0x63   :  { %465 = vmatpush.msra.mxu0 %v353_v14  ;;  %449 = vmatpush.msrb.mxu3 %v376_v17 }
  0x64   :  { %485 = vmatpush.msra.mxu1 %v385_v59  ;;  %v516_v59 = vld [vmem:[#allocation11 + $0xa0] sm:$0xff] }
  0x65   :  { %466 = vmatpush.msra.mxu0 %v351_v18 }
  0x66   :  { %486 = vmatpush.msra.mxu1 %v383_v7  ;;  %v408_v7 = vld [vmem:[%s891_s6] sm:$0x3]  ;;  %s795_s6 = smov [#allocation13]  }
  0x67   :  { %467 = vmatpush.msra.mxu0 %v349_v21  ;;  %v411_v8 = vperm.slane %v408_v7, 1  ;;  %v410_v13 = vperm.slane %v408_v7, 0  ;;  %s578_s21 = sshll.u32 %s795_s6, 4  ;;  %s579_s21 = int_to_ptr.vmem [resolvable:$true] %s578_s21 }
  0x68   :  { %487 = vmatpush.msra.mxu1 %v381_v11 }
  0x69   :  { %468 = vmatpush.msra.mxu0 %v347_v23 }
  0x6a   :  { %488 = vmatpush.msra.mxu1 %v379_v15 }
  0x6b   :  { %469 = vmatpush.msra.mxu0 %v345_v25 }
  0x6c   :  { %489 = vmatpush.msra.mxu1 %v377_v19 }
  0xa9   :  { %v167_v62 = vpop.f32.mrf.mxu0 }
  0xaa   :  { %v187_v63 = vpop.f32.mrf.mxu1  ;;  %v168_v0 = vadd.f32 %v167_v62, %v142_v60  ;;  %v502_v60 = vld [vmem:[#allocation11 + $0x30] sm:$0xff]  ;;  %v501_v62 = vld [vmem:[#allocation11 + $0x28] sm:$0xff] }
  0xab   :  { %v188_v1 = vadd.f32 %v187_v63, %v143_v61  ;;  %v515_v61 = vld [vmem:[#allocation11 + $0x98] sm:$0xff]  ;;  %v514_v63 = vld [vmem:[#allocation11 + $0x90] sm:$0xff] }
  0xac   :  { %v190_v2 = vmax.f32 %v168_v0, 0.0  ;;  %v500_v0 = vld [vmem:[#allocation11 + $0x20] sm:$0xff] }
  0xad   :  { %v191_v3 = vmax.f32 %v188_v1, 0.0  ;;  %v513_v1 = vld [vmem:[#allocation11 + $0x88] sm:$0xff] }
  0xae   :  { %278 = vmatmul.f32.vlgmr.msra.gmra.mxu2 %v190_v2  ;;  %318 = vmatmul.f32.vlgmr.msrb.gmra.mxu0 %v190_v2  ;;  %v499_v2 = vld [vmem:[#allocation11 + $0x18] sm:$0xff] }
  0xaf   :  { %298 = vmatmul.f32.vlgmr.msra.gmra.mxu3 %v191_v3  ;;  %338 = vmatmul.f32.vlgmr.msrb.gmra.mxu1 %v191_v3  ;;  %v512_v3 = vld [vmem:[#allocation11 + $0x80] sm:$0xff] }
  0xb0   :  { %552 = vmatpush.msra.mxu3 %v527_v26  ;;  %532 = vmatpush.msra.mxu2 %v511_v28 }
  0xb2   :  { %553 = vmatpush.msra.mxu3 %v526_v27  ;;  %533 = vmatpush.msra.mxu2 %v510_v29 }
  0xb4   :  { %554 = vmatpush.msra.mxu3 %v525_v30  ;;  %534 = vmatpush.msra.mxu2 %v509_v31 }
  0xb6   :  { %555 = vmatpush.msra.mxu3 %v524_v32  ;;  %535 = vmatpush.msra.mxu2 %v508_v33 }
  0xb8   :  { %556 = vmatpush.msra.mxu3 %v523_v34  ;;  %536 = vmatpush.msra.mxu2 %v507_v35 }
  0xba   :  { %557 = vmatpush.msra.mxu3 %v522_v36  ;;  %537 = vmatpush.msra.mxu2 %v506_v37 }
  0xbc   :  { %558 = vmatpush.msra.mxu3 %v521_v38  ;;  %538 = vmatpush.msra.mxu2 %v505_v54 }
  0xbe   :  { %559 = vmatpush.msra.mxu3 %v520_v39  ;;  %539 = vmatpush.msra.mxu2 %v504_v56 }
  0xc0   :  { %560 = vmatpush.msra.mxu3 %v519_v41  ;;  %540 = vmatpush.msra.mxu2 %v503_v58 }
  0xc2   :  { %561 = vmatpush.msra.mxu3 %v518_v55  ;;  %541 = vmatpush.msra.mxu2 %v502_v60 }
  0xc4   :  { %562 = vmatpush.msra.mxu3 %v517_v57  ;;  %542 = vmatpush.msra.mxu2 %v501_v62 }
  0xc6   :  { %563 = vmatpush.msra.mxu3 %v516_v59  ;;  %543 = vmatpush.msra.mxu2 %v500_v0 }
  0xc8   :  { %564 = vmatpush.msra.mxu3 %v515_v61  ;;  %544 = vmatpush.msra.mxu2 %v499_v2 }
  0xca   :  { %565 = vmatpush.msra.mxu3 %v514_v63  ;;  %545 = vmatpush.msra.mxu2 %v498_v4 }
  0xcc   :  { %566 = vmatpush.msra.mxu3 %v513_v1  ;;  %546 = vmatpush.msra.mxu2 %v497_v5 }
  0xce   :  { %567 = vmatpush.msra.mxu3 %v512_v3  ;;  %547 = vmatpush.msra.mxu2 %v496_v6 }
 0x12b   :  { %v319_v43 = vpop.f32.mrf.mxu0 }
 0x12c   :  { %v320_v44 = vadd.f32 %v319_v43, %v259_v42  ;;  %v339_v45 = vpop.f32.mrf.mxu1 }
 0x12e   :  { %v340_v46 = vadd.f32 %v339_v45, %v320_v44 }
 0x130   :  { %v343_v48 = vmax.f32 %v340_v46, 0.0 }
 0x131   :  { %v279_v49 = vpop.f32.mrf.mxu2 }
 0x132   :  { %v280_v50 = vadd.f32 %v279_v49, %v258_v47  ;;  %450 = vmatmul.f32.vlgmr.msrb.gmra.mxu3 %v343_v48  ;;  %490 = vmatmul.f32.vlgmr.msra.gmra.mxu1 %v343_v48  ;;  %v299_v51 = vpop.f32.mrf.mxu3 }
 0x134   :  { %v300_v52 = vadd.f32 %v299_v51, %v280_v50 }
 0x136   :  { %v342_v53 = vmax.f32 %v300_v52, 0.0 }
 0x138   :  { %430 = vmatmul.f32.vlgmr.msrb.gmra.mxu2 %v342_v53  ;;  %470 = vmatmul.f32.vlgmr.msra.gmra.mxu0 %v342_v53 }
 0x1af   :  { %v491_v11 = vpop.f32.mrf.mxu1 }
 0x1b5   :  { %v471_v9 = vpop.f32.mrf.mxu0  ;;  %v451_v17 = vpop.f32.mrf.mxu3 }
 0x1b6   :  { %v472_v10 = vadd.f32 %v471_v9, %v411_v8 }
 0x1b8   :  { %v492_v12 = vadd.f32 %v491_v11, %v472_v10 }
 0x1ba   :  { %v495_v14 = vmax.f32 %v492_v12, 0.0 }
 0x1bb   :  { %v431_v15 = vpop.f32.mrf.mxu2 }
 0x1bc   :  { %v432_v16 = vadd.f32 %v431_v15, %v410_v13  ;;  %568 = vmatmul.f32.vlgmr.msra.gmra.mxu3 %v495_v14 }
 0x1be   :  { %v452_v18 = vadd.f32 %v451_v17, %v432_v16 }
 0x1c0   :  { %v494_v19 = vmax.f32 %v452_v18, 0.0 }
 0x1c2   :  { %548 = vmatmul.f32.vlgmr.msra.gmra.mxu2 %v494_v19 }
 0x23f   :  { %v569_v23 = vpop.f32.mrf.mxu3 }
 0x245   :  { %v549_v21 = vpop.f32.mrf.mxu2 }
 0x246   :  { %v550_v22 = vadd.f32 %v606_v20, %v549_v21 }
 0x248   :  { %v570_v24 = vadd.f32 %v569_v23, %v550_v22 }
 0x24a   :  { %572 = vst [vmem:[#allocation13] sm:$0xff] %v570_v24 }
 0x24b   :  { %583 = dma.vmem_to_hbm [thread:$0]  %s579_s21, 128, %s581_s3, [#allocation4]  }
 0x24c   :  { %783 = dma.done.wait [#allocation4], 128  }
 0x24d   :  { %784 = vsyncadd [#allocation4], 4294967168 }
 0x24e   :  { %588 = vsyncpa [#allocation3], 1 }
 0x24f   :  { %589 = vsyncpa [#allocation6], 1 }
 0x250   :  { %590 = vsyncpa [#allocation9], 1 }
 0x251   :  { %591 = vsyncpa [#allocation12], 1 }
 0x252   :  { %592 = vsyncpa [#allocation4], 1 }

// kernel: tpu_custom_call.1
= control target key start
LH: loop header
LB: loop body
LE: loop exit
PB: predicated region body
PF: predicated region fallthrough
CT: control target
= control target key end

     0   :  { %14 = vsyncpa [#allocation3], 0  ;;  %s885_s0 = inlined_call_operand.hbm [shape: f32[8,64], index: 0, kind: input, shape index: {}]   ;;  %s886_s1 = inlined_call_operand.hbm [shape: f32[64,256], index: 1, kind: input, shape index: {}]   ;;  %s887_s2 = inlined_call_operand.hbm [shape: f32[1,256], index: 2, kind: input, shape index: {}]   ;;  %s888_s3 = inlined_call_operand.hbm [shape: f32[256,256], index: 3, kind: input, shape index: {}]   ;;  %s889_s4 = inlined_call_operand.vmem [shape: f32[1,256], index: 4, kind: input, shape index: {}]   ;;  %s890_s5 = inlined_call_operand.hbm [shape: f32[256,256], index: 5, kind: input, shape index: {}]   ;;  %s891_s6 = inlined_call_operand.vmem [shape: f32[1,256], index: 6, kind: input, shape index: {}]   ;;  %s892_s7 = inlined_call_operand.hbm [shape: f32[256,128], index: 7, kind: input, shape index: {}]   ;;  %s893_s8 = inlined_call_operand.vmem [shape: f32[1,128], index: 8, kind: input, shape index: {}]   ;;  %s894_s9 = inlined_call_operand.hbm [shape: f32[8,128], index: 9, kind: output, shape index: {}]  }
   0x1   :  { %15 = vsyncpa [#allocation6], 0 }
   0x2   :  { %16 = vsyncpa [#allocation9], 0 }
   0x3   :  { %17 = vsyncpa [#allocation12], 0  ;;  %s34_s11 = sshll.u32 %s886_s1, 4  ;;  %s35_s11 = int_to_ptr.hbm [resolvable:$true] %s34_s11 }
   0x4   :  { %18 = vsyncpa [#allocation4], 0  ;;  %s785_s12 = smov [#allocation5]   ;;  %s58_s16 = sshll.u32 %s888_s3, 4  ;;  %s59_s16 = int_to_ptr.hbm [resolvable:$true] %s58_s16 }
   0x5   :  { %s36_s13 = sshll.u32 %s785_s12, 4  ;;  %s786_s17 = smov 256   ;;  %s37_s13 = int_to_ptr.vmem [resolvable:$true] %s36_s13 }
   0x6   :  { %s787_s18 = smov 16   ;;  %s788_s19 = smov [#allocation8]  }
   0x7   :  { %42 = dma.hbm_to_vmem [thread:$0]  %s35_s11, 2048, %s37_s13, [#allocation6], %s786_s17, %s786_s17, %s787_s18  }
   0x8   :  { %s60_s20 = sshll.u32 %s788_s19, 4  ;;  %s24_s22 = sshll.u32 %s885_s0, 4  ;;  %s61_s20 = int_to_ptr.vmem [resolvable:$true] %s60_s20  ;;  %s25_s22 = int_to_ptr.hbm [resolvable:$true] %s24_s22 }
   0x9   :  { %66 = dma.hbm_to_vmem [thread:$0]  %s59_s16, 8192, %s61_s20, [#allocation9], %s786_s17, %s786_s17, %s787_s18  }
   0xa   :  { %s48_s24 = sshll.u32 %s887_s2, 4  ;;  %s789_s25 = smov [#allocation2]   ;;  %s49_s24 = int_to_ptr.hbm [resolvable:$true] %s48_s24 }
   0xb   :  { %s26_s26 = sshll.u32 %s789_s25, 4  ;;  %s790_s27 = smov [#allocation7]   ;;  %s27_s26 = int_to_ptr.vmem [resolvable:$true] %s26_s26 }
   0xc   :  { %29 = dma.hbm_to_vmem [thread:$0]  %s25_s22, 128, %s27_s26, [#allocation3]  }
   0xd   :  { %s50_s28 = sshll.u32 %s790_s27, 4  ;;  %s73_s0 = sshll.u32 %s890_s5, 4  ;;  %s51_s28 = int_to_ptr.vmem [resolvable:$true] %s50_s28  ;;  %s74_s0 = int_to_ptr.hbm [resolvable:$true] %s73_s0 }
   0xe   :  { %53 = dma.hbm_to_vmem [thread:$0]  %s49_s24, 32, %s51_s28, [#allocation6]  }
   0xf   :  { %s88_s12 = sshll.u32 %s892_s7, 4  ;;  %s791_s13 = smov [#allocation10]   ;;  %s89_s12 = int_to_ptr.hbm [resolvable:$true] %s88_s12 }
  0x10   :  { %s75_s2 = sshll.u32 %s791_s13, 4  ;;  %s792_s14 = smov [#allocation11]   ;;  %s76_s2 = int_to_ptr.vmem [resolvable:$true] %s75_s2 }
  0x11   :  { %81 = dma.hbm_to_vmem [thread:$0]  %s74_s0, 8192, %s76_s2, [#allocation9], %s786_s17, %s786_s17, %s787_s18  }
  0x12   :  { %s90_s15 = sshll.u32 %s792_s14, 4  ;;  %s793_s16 = smov 128   ;;  %s91_s15 = int_to_ptr.vmem [resolvable:$true] %s90_s15 }
  0x13   :  { %s794_s5 = smov 8  }
  0x14   :  { %96 = dma.hbm_to_vmem [thread:$0]  %s89_s12, 4096, %s91_s15, [#allocation12], %s793_s16, %s793_s16, %s794_s5  }
  0x15   :  { %775 = dma.done.wait [#allocation3], 128  }
  0x16   :  { %776 = vsyncadd [#allocation3], 4294967168 }
  0x17   :  { %777 = dma.done.wait [#allocation6], 2080  }
  0x18   :  { %778 = vsyncadd [#allocation6], 4294965216 }
  0x19   :  { %779 = dma.done.wait [#allocation9], 16384  }
  0x1a   :  { %780 = vsyncadd [#allocation9], 4294950912 }
  0x1b   :  { %781 = dma.done.wait [#allocation12], 4096  }
  0x1c   :  { %782 = vsyncadd [#allocation12], 4294963200  ;;  %v138_v0 = vld [vmem:[#allocation5 + $0x70] sm:$0xff]  ;;  %v136_v1 = vld [vmem:[#allocation5 + $0x60] sm:$0xff]  ;;  %vm146_vm0 = vcmask 523264   ;;  %s580_s3 = sshll.u32 %s894_s9, 4  ;;  %s581_s3 = int_to_ptr.hbm [resolvable:$true] %s580_s3 }
  0x1d   :  { %v139_v2 = vld [vmem:[#allocation5 + $0x78] sm:$0xff]  ;;  %158 = vmatpush.msra.mxu0 %v138_v0  ;;  %v137_v3 = vld [vmem:[#allocation5 + $0x68] sm:$0xff]  ;;  %v134_v4 = vld [vmem:[#allocation5 + $0x50] sm:$0xff] }
  0x1e   :  { %178 = vmatpush.msra.mxu1 %v139_v2  ;;  %v135_v5 = vld [vmem:[#allocation5 + $0x58] sm:$0xff]  ;;  %v132_v6 = vld [vmem:[#allocation5 + $0x40] sm:$0xff]  ;;  %v133_v7 = vld [vmem:[#allocation5 + $0x48] sm:$0xff] }
  0x1f   :  { %159 = vmatpush.msra.mxu0 %v136_v1  ;;  %v130_v8 = vld [vmem:[#allocation5 + $0x30] sm:$0xff]  ;;  %v131_v10 = vld [vmem:[#allocation5 + $0x38] sm:$0xff]  ;;  %v220_v11 = vld [vmem:[#allocation8 + $0xe0] sm:$0xff] }
  0x20   :  { %179 = vmatpush.msra.mxu1 %v137_v3  ;;  %v222_v9 = vld [vmem:[#allocation8 + $0xf0] sm:$0xff]  ;;  %v128_v14 = vld [vmem:[#allocation5 + $0x20] sm:$0xff]  ;;  %v129_v15 = vld [vmem:[#allocation5 + $0x28] sm:$0xff] }
  0x21   :  { %160 = vmatpush.msra.mxu0 %v134_v4  ;;  %262 = vmatpush.msra.mxu2 %v222_v9  ;;  %v254_v12 = vld [vmem:[#allocation8 + $0x1f0] sm:$0xff]  ;;  %v252_v16 = vld [vmem:[#allocation8 + $0x1e0] sm:$0xff]  ;;  %v223_v26 = vld [vmem:[#allocation8 + $0xf8] sm:$0xff] }
  0x22   :  { %180 = vmatpush.msra.mxu1 %v135_v5  ;;  %v218_v13 = vld [vmem:[#allocation8 + $0xd0] sm:$0xff]  ;;  %282 = vmatpush.msra.mxu3 %v254_v12  ;;  %v216_v17 = vld [vmem:[#allocation8 + $0xc0] sm:$0xff]  ;;  %v255_v27 = vld [vmem:[#allocation8 + $0x1f8] sm:$0xff] }
  0x23   :  { %161 = vmatpush.msra.mxu0 %v132_v6  ;;  %263 = vmatpush.msra.mxu2 %v220_v11  ;;  %v250_v18 = vld [vmem:[#allocation8 + $0x1d0] sm:$0xff]  ;;  %v248_v22 = vld [vmem:[#allocation8 + $0x1c0] sm:$0xff]  ;;  %v221_v30 = vld [vmem:[#allocation8 + $0xe8] sm:$0xff] }
  0x24   :  { %181 = vmatpush.msra.mxu1 %v133_v7  ;;  %v126_v19 = vld [vmem:[#allocation5 + $0x10] sm:$0xff]  ;;  %v127_v20 = vld [vmem:[#allocation5 + $0x18] sm:$0xff]  ;;  %283 = vmatpush.msra.mxu3 %v252_v16  ;;  %v124_v23 = vld [vmem:[#allocation5] sm:$0xff] }
  0x25   :  { %162 = vmatpush.msra.mxu0 %v130_v8  ;;  %264 = vmatpush.msra.mxu2 %v218_v13  ;;  %v214_v21 = vld [vmem:[#allocation8 + $0xb0] sm:$0xff]  ;;  %v125_v24 = vld [vmem:[#allocation5 + $0x8] sm:$0xff]  ;;  %v219_v34 = vld [vmem:[#allocation8 + $0xd8] sm:$0xff] }
  0x26   :  { %182 = vmatpush.msra.mxu1 %v131_v10  ;;  %284 = vmatpush.msra.mxu3 %v250_v18  ;;  %v123_v25 = vld [vmem:[#allocation2] sm:$0xff]  ;;  %v212_v28 = vld [vmem:[#allocation8 + $0xa0] sm:$0xff]  ;;  %v253_v31 = vld [vmem:[#allocation8 + $0x1e8] sm:$0xff] }
  0x27   :  { %163 = vmatpush.msra.mxu0 %v128_v14  ;;  %265 = vmatpush.msra.mxu2 %v216_v17  ;;  %v246_v29 = vld [vmem:[#allocation8 + $0x1b0] sm:$0xff]  ;;  %v244_v33 = vld [vmem:[#allocation8 + $0x1a0] sm:$0xff]  ;;  %v251_v35 = vld [vmem:[#allocation8 + $0x1d8] sm:$0xff] }
  0x28   :  { %183 = vmatpush.msra.mxu1 %v129_v15  ;;  %285 = vmatpush.msra.mxu3 %v248_v22  ;;  %v210_v32 = vld [vmem:[#allocation8 + $0x90] sm:$0xff]  ;;  %v208_v36 = vld [vmem:[#allocation8 + $0x80] sm:$0xff]  ;;  %v217_v38 = vld [vmem:[#allocation8 + $0xc8] sm:$0xff] }
  0x29   :  { %164 = vmatpush.msra.mxu0 %v126_v19  ;;  %266 = vmatpush.msra.mxu2 %v214_v21  ;;  %v242_v37 = vld [vmem:[#allocation8 + $0x190] sm:$0xff]  ;;  %v249_v39 = vld [vmem:[#allocation8 + $0x1c8] sm:$0xff]  ;;  %v240_v41 = vld [vmem:[#allocation8 + $0x180] sm:$0xff] }
  0x2a   :  { %184 = vmatpush.msra.mxu1 %v127_v20  ;;  %286 = vmatpush.msra.mxu3 %v246_v29  ;;  %v206_v40 = vld [vmem:[#allocation8 + $0x70] sm:$0xff]  ;;  %v215_v42 = vld [vmem:[#allocation8 + $0xb8] sm:$0xff]  ;;  %v204_v44 = vld [vmem:[#allocation8 + $0x60] sm:$0xff] }
  0x2b   :  { %165 = vmatpush.msra.mxu0 %v124_v23  ;;  %267 = vmatpush.msra.mxu2 %v212_v28  ;;  %v247_v43 = vld [vmem:[#allocation8 + $0x1b8] sm:$0xff]  ;;  %v238_v45 = vld [vmem:[#allocation8 + $0x170] sm:$0xff]  ;;  %v213_v46 = vld [vmem:[#allocation8 + $0xa8] sm:$0xff] }
  0x2c   :  { %185 = vmatpush.msra.mxu1 %v125_v24  ;;  %593 = vmatmul.msk.f32.vlgmr.msra.gmra.mxu0 %vm146_vm0, %v123_v25  ;;  %v245_v47 = vld [vmem:[#allocation8 + $0x1a8] sm:$0xff]  ;;  %v202_v48 = vld [vmem:[#allocation8 + $0x50] sm:$0xff]  ;;  %v236_v49 = vld [vmem:[#allocation8 + $0x160] sm:$0xff] }
  0x2d   :  { %594 = vmatmul.msk.f32.vlgmr.msra.gmra.mxu1 %vm146_vm0, %v123_v25  ;;  %302 = vmatpush.msrb.mxu0 %v223_v26  ;;  %v211_v50 = vld [vmem:[#allocation8 + $0x98] sm:$0xff]  ;;  %v200_v52 = vld [vmem:[#allocation8 + $0x40] sm:$0xff]  ;;  %v234_v53 = vld [vmem:[#allocation8 + $0x150] sm:$0xff] }
  0x2e   :  { %322 = vmatpush.msrb.mxu1 %v255_v27  ;;  %268 = vmatpush.msra.mxu2 %v210_v32  ;;  %v243_v51 = vld [vmem:[#allocation8 + $0x198] sm:$0xff]  ;;  %v209_v54 = vld [vmem:[#allocation8 + $0x88] sm:$0xff]  ;;  %v198_v56 = vld [vmem:[#allocation8 + $0x30] sm:$0xff] }
  0x2f   :  { %303 = vmatpush.msrb.mxu0 %v221_v30  ;;  %287 = vmatpush.msra.mxu3 %v244_v33  ;;  %v241_v55 = vld [vmem:[#allocation8 + $0x188] sm:$0xff]  ;;  %v232_v57 = vld [vmem:[#allocation8 + $0x140] sm:$0xff]  ;;  %v207_v58 = vld [vmem:[#allocation8 + $0x78] sm:$0xff] }
  0x30   :  { %323 = vmatpush.msrb.mxu1 %v253_v31  ;;  %269 = vmatpush.msra.mxu2 %v208_v36  ;;  %v239_v59 = vld [vmem:[#allocation8 + $0x178] sm:$0xff]  ;;  %v205_v60 = vld [vmem:[#allocation8 + $0x68] sm:$0xff]  ;;  %v196_v3 = vld [vmem:[#allocation8 + $0x20] sm:$0xff] }
  0x31   :  { %304 = vmatpush.msrb.mxu0 %v219_v34  ;;  %288 = vmatpush.msra.mxu3 %v242_v37  ;;  %v237_v61 = vld [vmem:[#allocation8 + $0x168] sm:$0xff]  ;;  %v203_v62 = vld [vmem:[#allocation8 + $0x58] sm:$0xff]  ;;  %v230_v4 = vld [vmem:[#allocation8 + $0x130] sm:$0xff] }
  0x32   :  { %324 = vmatpush.msrb.mxu1 %v251_v35  ;;  %270 = vmatpush.msra.mxu2 %v206_v40  ;;  %v235_v63 = vld [vmem:[#allocation8 + $0x158] sm:$0xff]  ;;  %v201_v0 = vld [vmem:[#allocation8 + $0x48] sm:$0xff]  ;;  %v194_v7 = vld [vmem:[#allocation8 + $0x10] sm:$0xff] }
  0x33   :  { %305 = vmatpush.msrb.mxu0 %v217_v38  ;;  %289 = vmatpush.msra.mxu3 %v240_v41  ;;  %v233_v1 = vld [vmem:[#allocation8 + $0x148] sm:$0xff]  ;;  %v199_v2 = vld [vmem:[#allocation8 + $0x38] sm:$0xff]  ;;  %v228_v8 = vld [vmem:[#allocation8 + $0x120] sm:$0xff] }
  0x34   :  { %325 = vmatpush.msrb.mxu1 %v249_v39  ;;  %271 = vmatpush.msra.mxu2 %v204_v44  ;;  %v197_v5 = vld [vmem:[#allocation8 + $0x28] sm:$0xff]  ;;  %v231_v6 = vld [vmem:[#allocation8 + $0x138] sm:$0xff]  ;;  %v192_v11 = vld [vmem:[#allocation8] sm:$0xff] }
  0x35   :  { %306 = vmatpush.msrb.mxu0 %v215_v42  ;;  %290 = vmatpush.msra.mxu3 %v238_v45  ;;  %v195_v9 = vld [vmem:[#allocation8 + $0x18] sm:$0xff]  ;;  %v229_v10 = vld [vmem:[#allocation8 + $0x128] sm:$0xff]  ;;  %v226_v12 = vld [vmem:[#allocation8 + $0x110] sm:$0xff] }
  0x36   :  { %326 = vmatpush.msrb.mxu1 %v247_v43  ;;  %272 = vmatpush.msra.mxu2 %v202_v48  ;;  %v193_v13 = vld [vmem:[#allocation8 + $0x8] sm:$0xff]  ;;  %v227_v14 = vld [vmem:[#allocation8 + $0x118] sm:$0xff]  ;;  %v224_v15 = vld [vmem:[#allocation8 + $0x100] sm:$0xff] }
  0x37   :  { %307 = vmatpush.msrb.mxu0 %v213_v46  ;;  %291 = vmatpush.msra.mxu3 %v236_v49  ;;  %v225_v16 = vld [vmem:[#allocation8 + $0x108] sm:$0xff]  ;;  %v406_v17 = vld [vmem:[#allocation10 + $0x1f0] sm:$0xff]  ;;  %v407_v18 = vld [vmem:[#allocation10 + $0x1f8] sm:$0xff] }
  0x38   :  { %327 = vmatpush.msrb.mxu1 %v245_v47  ;;  %273 = vmatpush.msra.mxu2 %v200_v52  ;;  %v404_v19 = vld [vmem:[#allocation10 + $0x1e0] sm:$0xff]  ;;  %v405_v20 = vld [vmem:[#allocation10 + $0x1e8] sm:$0xff]  ;;  %v402_v21 = vld [vmem:[#allocation10 + $0x1d0] sm:$0xff] }
  0x39   :  { %308 = vmatpush.msrb.mxu0 %v211_v50  ;;  %292 = vmatpush.msra.mxu3 %v234_v53  ;;  %v374_v22 = vld [vmem:[#allocation10 + $0xf0] sm:$0xff]  ;;  %v375_v23 = vld [vmem:[#allocation10 + $0xf8] sm:$0xff]  ;;  %v372_v25 = vld [vmem:[#allocation10 + $0xe0] sm:$0xff] }
  0x3a   :  { %328 = vmatpush.msrb.mxu1 %v243_v51  ;;  %274 = vmatpush.msra.mxu2 %v198_v56  ;;  %v403_v24 = vld [vmem:[#allocation10 + $0x1d8] sm:$0xff]  ;;  %v400_v26 = vld [vmem:[#allocation10 + $0x1c0] sm:$0xff]  ;;  %v373_v27 = vld [vmem:[#allocation10 + $0xe8] sm:$0xff] }
  0x3b   :  { %309 = vmatpush.msrb.mxu0 %v209_v54  ;;  %293 = vmatpush.msra.mxu3 %v232_v57  ;;  %v370_v28 = vld [vmem:[#allocation10 + $0xd0] sm:$0xff]  ;;  %v401_v29 = vld [vmem:[#allocation10 + $0x1c8] sm:$0xff]  ;;  %v371_v30 = vld [vmem:[#allocation10 + $0xd8] sm:$0xff] }
  0x3c   :  { %329 = vmatpush.msrb.mxu1 %v241_v55  ;;  %275 = vmatpush.msra.mxu2 %v196_v3  ;;  %v398_v31 = vld [vmem:[#allocation10 + $0x1b0] sm:$0xff]  ;;  %v368_v32 = vld [vmem:[#allocation10 + $0xc0] sm:$0xff]  ;;  %v399_v33 = vld [vmem:[#allocation10 + $0x1b8] sm:$0xff] }
  0x3d   :  { %310 = vmatpush.msrb.mxu0 %v207_v58  ;;  %294 = vmatpush.msra.mxu3 %v230_v4  ;;  %v369_v34 = vld [vmem:[#allocation10 + $0xc8] sm:$0xff]  ;;  %v396_v35 = vld [vmem:[#allocation10 + $0x1a0] sm:$0xff]  ;;  %v366_v36 = vld [vmem:[#allocation10 + $0xb0] sm:$0xff] }
  0x3e   :  { %330 = vmatpush.msrb.mxu1 %v239_v59  ;;  %276 = vmatpush.msra.mxu2 %v194_v7  ;;  %v397_v37 = vld [vmem:[#allocation10 + $0x1a8] sm:$0xff]  ;;  %v367_v38 = vld [vmem:[#allocation10 + $0xb8] sm:$0xff]  ;;  %v394_v39 = vld [vmem:[#allocation10 + $0x190] sm:$0xff] }
  0x3f   :  { %311 = vmatpush.msrb.mxu0 %v205_v60  ;;  %295 = vmatpush.msra.mxu3 %v228_v8  ;;  %v364_v40 = vld [vmem:[#allocation10 + $0xa0] sm:$0xff]  ;;  %v395_v41 = vld [vmem:[#allocation10 + $0x198] sm:$0xff]  ;;  %v365_v42 = vld [vmem:[#allocation10 + $0xa8] sm:$0xff] }
  0x40   :  { %331 = vmatpush.msrb.mxu1 %v237_v61  ;;  %277 = vmatpush.msra.mxu2 %v192_v11  ;;  %v392_v43 = vld [vmem:[#allocation10 + $0x180] sm:$0xff]  ;;  %v362_v44 = vld [vmem:[#allocation10 + $0x90] sm:$0xff]  ;;  %v393_v45 = vld [vmem:[#allocation10 + $0x188] sm:$0xff] }
  0x41   :  { %312 = vmatpush.msrb.mxu0 %v203_v62  ;;  %296 = vmatpush.msra.mxu3 %v226_v12  ;;  %v363_v46 = vld [vmem:[#allocation10 + $0x98] sm:$0xff]  ;;  %v390_v47 = vld [vmem:[#allocation10 + $0x170] sm:$0xff]  ;;  %v360_v48 = vld [vmem:[#allocation10 + $0x80] sm:$0xff] }
  0x42   :  { %332 = vmatpush.msrb.mxu1 %v235_v63  ;;  %414 = vmatpush.msrb.mxu2 %v374_v22  ;;  %v391_v49 = vld [vmem:[#allocation10 + $0x178] sm:$0xff]  ;;  %v361_v50 = vld [vmem:[#allocation10 + $0x88] sm:$0xff]  ;;  %v388_v51 = vld [vmem:[#allocation10 + $0x160] sm:$0xff] }
  0x43   :  { %313 = vmatpush.msrb.mxu0 %v201_v0  ;;  %297 = vmatpush.msra.mxu3 %v224_v15  ;;  %v358_v52 = vld [vmem:[#allocation10 + $0x70] sm:$0xff]  ;;  %v389_v53 = vld [vmem:[#allocation10 + $0x168] sm:$0xff]  ;;  %v359_v54 = vld [vmem:[#allocation10 + $0x78] sm:$0xff] }
  0x44   :  { %333 = vmatpush.msrb.mxu1 %v233_v1  ;;  %415 = vmatpush.msrb.mxu2 %v372_v25  ;;  %v386_v55 = vld [vmem:[#allocation10 + $0x150] sm:$0xff]  ;;  %v387_v56 = vld [vmem:[#allocation10 + $0x158] sm:$0xff]  ;;  %v384_v58 = vld [vmem:[#allocation10 + $0x140] sm:$0xff] }
  0x45   :  { %314 = vmatpush.msrb.mxu0 %v199_v2  ;;  %434 = vmatpush.msrb.mxu3 %v406_v17  ;;  %v140_v57 = vld [vmem:[#allocation7] sm:$0x3]  ;;  %v385_v59 = vld [vmem:[#allocation10 + $0x148] sm:$0xff]  ;;  %v356_v4 = vld [vmem:[#allocation10 + $0x60] sm:$0xff] }
  0x46   :  { %334 = vmatpush.msrb.mxu1 %v231_v6  ;;  %416 = vmatpush.msrb.mxu2 %v370_v28  ;;  %v142_v60 = vperm.slane %v140_v57, 0  ;;  %v143_v61 = vperm.slane %v140_v57, 1  ;;  %v357_v6 = vld [vmem:[#allocation10 + $0x68] sm:$0xff]  ;;  %v383_v7 = vld [vmem:[#allocation10 + $0x138] sm:$0xff]  ;;  %v354_v8 = vld [vmem:[#allocation10 + $0x50] sm:$0xff] }
  0x47   :  { %315 = vmatpush.msrb.mxu0 %v197_v5  ;;  %435 = vmatpush.msrb.mxu3 %v404_v19  ;;  %v382_v5 = vld [vmem:[#allocation10 + $0x130] sm:$0xff]  ;;  %v381_v11 = vld [vmem:[#allocation10 + $0x128] sm:$0xff]  ;;  %v352_v12 = vld [vmem:[#allocation10 + $0x40] sm:$0xff] }
  0x48   :  { %335 = vmatpush.msrb.mxu1 %v229_v10  ;;  %417 = vmatpush.msrb.mxu2 %v368_v32  ;;  %v355_v10 = vld [vmem:[#allocation10 + $0x58] sm:$0xff]  ;;  %v376_v17 = vld [vmem:[#allocation10 + $0x100] sm:$0xff]  ;;  %v377_v19 = vld [vmem:[#allocation10 + $0x108] sm:$0xff] }
  0x49   :  { %316 = vmatpush.msrb.mxu0 %v195_v9  ;;  %436 = vmatpush.msrb.mxu3 %v402_v21  ;;  %v380_v9 = vld [vmem:[#allocation10 + $0x120] sm:$0xff]  ;;  %v379_v15 = vld [vmem:[#allocation10 + $0x118] sm:$0xff]  ;;  %v349_v21 = vld [vmem:[#allocation10 + $0x28] sm:$0xff] }
  0x4a   :  { %336 = vmatpush.msrb.mxu1 %v227_v14  ;;  %418 = vmatpush.msrb.mxu2 %v366_v36  ;;  %v353_v14 = vld [vmem:[#allocation10 + $0x48] sm:$0xff]  ;;  %v346_v22 = vld [vmem:[#allocation10 + $0x10] sm:$0xff]  ;;  %v511_v28 = vld [vmem:[#allocation11 + $0x78] sm:$0xff] }
  0x4b   :  { %317 = vmatpush.msrb.mxu0 %v193_v13  ;;  %437 = vmatpush.msrb.mxu3 %v400_v26  ;;  %v378_v13 = vld [vmem:[#allocation10 + $0x110] sm:$0xff]  ;;  %v345_v25 = vld [vmem:[#allocation10 + $0x8] sm:$0xff]  ;;  %v527_v26 = vld [vmem:[#allocation11 + $0xf8] sm:$0xff] }
  0x4c   :  { %337 = vmatpush.msrb.mxu1 %v225_v16  ;;  %419 = vmatpush.msrb.mxu2 %v364_v40  ;;  %v350_v16 = vld [vmem:[#allocation10 + $0x30] sm:$0xff]  ;;  %v524_v32 = vld [vmem:[#allocation11 + $0xe0] sm:$0xff]  ;;  %v517_v57 = vld [vmem:[#allocation11 + $0xa8] sm:$0xff] }
  0x4d   :  { %454 = vmatpush.msra.mxu0 %v375_v23  ;;  %438 = vmatpush.msrb.mxu3 %v398_v31  ;;  %v347_v23 = vld [vmem:[#allocation10 + $0x18] sm:$0xff]  ;;  %v509_v31 = vld [vmem:[#allocation11 + $0x68] sm:$0xff]  ;;  %v522_v36 = vld [vmem:[#allocation11 + $0xd0] sm:$0xff] }
  0x4e   :  { %474 = vmatpush.msra.mxu1 %v407_v18  ;;  %420 = vmatpush.msrb.mxu2 %v362_v44  ;;  %v351_v18 = vld [vmem:[#allocation10 + $0x38] sm:$0xff]  ;;  %v256_v40 = vld [vmem:[%s889_s4] sm:$0x3] }
  0x4f   :  { %455 = vmatpush.msra.mxu0 %v373_v27  ;;  %439 = vmatpush.msrb.mxu3 %v396_v35  ;;  %v526_v27 = vld [vmem:[#allocation11 + $0xf0] sm:$0xff]  ;;  %v507_v35 = vld [vmem:[#allocation11 + $0x58] sm:$0xff] }
  0x50   :  { %475 = vmatpush.msra.mxu1 %v405_v20  ;;  %421 = vmatpush.msrb.mxu2 %v360_v48  ;;  %v348_v20 = vld [vmem:[#allocation10 + $0x20] sm:$0xff] }
  0x51   :  { %456 = vmatpush.msra.mxu0 %v371_v30  ;;  %440 = vmatpush.msrb.mxu3 %v394_v39  ;;  %v525_v30 = vld [vmem:[#allocation11 + $0xe8] sm:$0xff]  ;;  %v520_v39 = vld [vmem:[#allocation11 + $0xc0] sm:$0xff] }
  0x52   :  { %476 = vmatpush.msra.mxu1 %v403_v24  ;;  %422 = vmatpush.msrb.mxu2 %v358_v52  ;;  %v344_v24 = vld [vmem:[#allocation10] sm:$0xff] }
  0x53   :  { %457 = vmatpush.msra.mxu0 %v369_v34  ;;  %441 = vmatpush.msrb.mxu3 %v392_v43  ;;  %v523_v34 = vld [vmem:[#allocation11 + $0xd8] sm:$0xff] }
  0x54   :  { %477 = vmatpush.msra.mxu1 %v401_v29  ;;  %423 = vmatpush.msrb.mxu2 %v356_v4  ;;  %v510_v29 = vld [vmem:[#allocation11 + $0x70] sm:$0xff] }
  0x55   :  { %458 = vmatpush.msra.mxu0 %v367_v38  ;;  %442 = vmatpush.msrb.mxu3 %v390_v47  ;;  %v521_v38 = vld [vmem:[#allocation11 + $0xc8] sm:$0xff]  ;;  %v258_v47 = vperm.slane %v256_v40, 0  ;;  %v498_v4 = vld [vmem:[#allocation11 + $0x10] sm:$0xff] }
  0x56   :  { %478 = vmatpush.msra.mxu1 %v399_v33  ;;  %424 = vmatpush.msrb.mxu2 %v354_v8  ;;  %v508_v33 = vld [vmem:[#allocation11 + $0x60] sm:$0xff] }
  0x57   :  { %459 = vmatpush.msra.mxu0 %v365_v42  ;;  %443 = vmatpush.msrb.mxu3 %v388_v51  ;;  %v259_v42 = vperm.slane %v256_v40, 1 }
  0x58   :  { %479 = vmatpush.msra.mxu1 %v397_v37  ;;  %425 = vmatpush.msrb.mxu2 %v352_v12  ;;  %v506_v37 = vld [vmem:[#allocation11 + $0x50] sm:$0xff] }
  0x59   :  { %460 = vmatpush.msra.mxu0 %v363_v46  ;;  %444 = vmatpush.msrb.mxu3 %v386_v55  ;;  %v518_v55 = vld [vmem:[#allocation11 + $0xb0] sm:$0xff] }
  0x5a   :  { %480 = vmatpush.msra.mxu1 %v395_v41  ;;  %426 = vmatpush.msrb.mxu2 %v350_v16  ;;  %v519_v41 = vld [vmem:[#allocation11 + $0xb8] sm:$0xff] }
  0x5b   :  { %461 = vmatpush.msra.mxu0 %v361_v50  ;;  %445 = vmatpush.msrb.mxu3 %v384_v58  ;;  %v503_v58 = vld [vmem:[#allocation11 + $0x38] sm:$0xff] }
  0x5c   :  { %481 = vmatpush.msra.mxu1 %v393_v45  ;;  %427 = vmatpush.msrb.mxu2 %v348_v20  ;;  %v606_v20 = vld [vmem:[%s893_s8] ss:$0 sm:$0xff] }
  0x5d   :  { %462 = vmatpush.msra.mxu0 %v359_v54  ;;  %446 = vmatpush.msrb.mxu3 %v382_v5  ;;  %v505_v54 = vld [vmem:[#allocation11 + $0x48] sm:$0xff] }
  0x5e   :  { %482 = vmatpush.msra.mxu1 %v391_v49  ;;  %428 = vmatpush.msrb.mxu2 %v346_v22  ;;  %v497_v5 = vld [vmem:[#allocation11 + $0x8] sm:$0xff] }
  0x5f   :  { %463 = vmatpush.msra.mxu0 %v357_v6  ;;  %447 = vmatpush.msrb.mxu3 %v380_v9  ;;  %v496_v6 = vld [vmem:[#allocation11] sm:$0xff] }
  0x60   :  { %483 = vmatpush.msra.mxu1 %v389_v53  ;;  %429 = vmatpush.msrb.mxu2 %v344_v24 }
  0x61   :  { %464 = vmatpush.msra.mxu0 %v355_v10  ;;  %448 = vmatpush.msrb.mxu3 %v378_v13 }
  0x62   :  { %484 = vmatpush.msra.mxu1 %v387_v56  ;;  %v504_v56 = vld [vmem:[#allocation11 + $0x40] sm:$0xff] }
  0x63   :  { %465 = vmatpush.msra.mxu0 %v353_v14  ;;  %449 = vmatpush.msrb.mxu3 %v376_v17 }
  0x64   :  { %485 = vmatpush.msra.mxu1 %v385_v59  ;;  %v516_v59 = vld [vmem:[#allocation11 + $0xa0] sm:$0xff] }
  0x65   :  { %466 = vmatpush.msra.mxu0 %v351_v18 }
  0x66   :  { %486 = vmatpush.msra.mxu1 %v383_v7  ;;  %v408_v7 = vld [vmem:[%s891_s6] sm:$0x3]  ;;  %s795_s6 = smov [#allocation13]  }
  0x67   :  { %467 = vmatpush.msra.mxu0 %v349_v21  ;;  %v411_v8 = vperm.slane %v408_v7, 1  ;;  %v410_v13 = vperm.slane %v408_v7, 0  ;;  %s578_s21 = sshll.u32 %s795_s6, 4  ;;  %s579_s21 = int_to_ptr.vmem [resolvable:$true] %s578_s21 }
  0x68   :  { %487 = vmatpush.msra.mxu1 %v381_v11 }
  0x69   :  { %468 = vmatpush.msra.mxu0 %v347_v23 }
  0x6a   :  { %488 = vmatpush.msra.mxu1 %v379_v15 }
  0x6b   :  { %469 = vmatpush.msra.mxu0 %v345_v25 }
  0x6c   :  { %489 = vmatpush.msra.mxu1 %v377_v19 }
  0xa9   :  { %v167_v62 = vpop.f32.mrf.mxu0 }
  0xaa   :  { %v187_v63 = vpop.f32.mrf.mxu1  ;;  %v168_v0 = vadd.f32 %v167_v62, %v142_v60  ;;  %v502_v60 = vld [vmem:[#allocation11 + $0x30] sm:$0xff]  ;;  %v501_v62 = vld [vmem:[#allocation11 + $0x28] sm:$0xff] }
  0xab   :  { %v188_v1 = vadd.f32 %v187_v63, %v143_v61  ;;  %v515_v61 = vld [vmem:[#allocation11 + $0x98] sm:$0xff]  ;;  %v514_v63 = vld [vmem:[#allocation11 + $0x90] sm:$0xff] }
  0xac   :  { %v190_v2 = vmax.f32 %v168_v0, 0.0  ;;  %v500_v0 = vld [vmem:[#allocation11 + $0x20] sm:$0xff] }
  0xad   :  { %v191_v3 = vmax.f32 %v188_v1, 0.0  ;;  %v513_v1 = vld [vmem:[#allocation11 + $0x88] sm:$0xff] }
  0xae   :  { %278 = vmatmul.f32.vlgmr.msra.gmra.mxu2 %v190_v2  ;;  %318 = vmatmul.f32.vlgmr.msrb.gmra.mxu0 %v190_v2  ;;  %v499_v2 = vld [vmem:[#allocation11 + $0x18] sm:$0xff] }
  0xaf   :  { %298 = vmatmul.f32.vlgmr.msra.gmra.mxu3 %v191_v3  ;;  %338 = vmatmul.f32.vlgmr.msrb.gmra.mxu1 %v191_v3  ;;  %v512_v3 = vld [vmem:[#allocation11 + $0x80] sm:$0xff] }
  0xb0   :  { %552 = vmatpush.msra.mxu3 %v527_v26  ;;  %532 = vmatpush.msra.mxu2 %v511_v28 }
  0xb2   :  { %553 = vmatpush.msra.mxu3 %v526_v27  ;;  %533 = vmatpush.msra.mxu2 %v510_v29 }
  0xb4   :  { %554 = vmatpush.msra.mxu3 %v525_v30  ;;  %534 = vmatpush.msra.mxu2 %v509_v31 }
  0xb6   :  { %555 = vmatpush.msra.mxu3 %v524_v32  ;;  %535 = vmatpush.msra.mxu2 %v508_v33 }
  0xb8   :  { %556 = vmatpush.msra.mxu3 %v523_v34  ;;  %536 = vmatpush.msra.mxu2 %v507_v35 }
  0xba   :  { %557 = vmatpush.msra.mxu3 %v522_v36  ;;  %537 = vmatpush.msra.mxu2 %v506_v37 }
  0xbc   :  { %558 = vmatpush.msra.mxu3 %v521_v38  ;;  %538 = vmatpush.msra.mxu2 %v505_v54 }
  0xbe   :  { %559 = vmatpush.msra.mxu3 %v520_v39  ;;  %539 = vmatpush.msra.mxu2 %v504_v56 }
  0xc0   :  { %560 = vmatpush.msra.mxu3 %v519_v41  ;;  %540 = vmatpush.msra.mxu2 %v503_v58 }
  0xc2   :  { %561 = vmatpush.msra.mxu3 %v518_v55  ;;  %541 = vmatpush.msra.mxu2 %v502_v60 }
  0xc4   :  { %562 = vmatpush.msra.mxu3 %v517_v57  ;;  %542 = vmatpush.msra.mxu2 %v501_v62 }
  0xc6   :  { %563 = vmatpush.msra.mxu3 %v516_v59  ;;  %543 = vmatpush.msra.mxu2 %v500_v0 }
  0xc8   :  { %564 = vmatpush.msra.mxu3 %v515_v61  ;;  %544 = vmatpush.msra.mxu2 %v499_v2 }
  0xca   :  { %565 = vmatpush.msra.mxu3 %v514_v63  ;;  %545 = vmatpush.msra.mxu2 %v498_v4 }
  0xcc   :  { %566 = vmatpush.msra.mxu3 %v513_v1  ;;  %546 = vmatpush.msra.mxu2 %v497_v5 }
  0xce   :  { %567 = vmatpush.msra.mxu3 %v512_v3  ;;  %547 = vmatpush.msra.mxu2 %v496_v6 }
 0x12b   :  { %v319_v43 = vpop.f32.mrf.mxu0 }
 0x12c   :  { %v320_v44 = vadd.f32 %v319_v43, %v259_v42  ;;  %v339_v45 = vpop.f32.mrf.mxu1 }
 0x12e   :  { %v340_v46 = vadd.f32 %v339_v45, %v320_v44 }
 0x130   :  { %v343_v48 = vmax.f32 %v340_v46, 0.0 }
 0x131   :  { %v279_v49 = vpop.f32.mrf.mxu2 }
 0x132   :  { %v280_v50 = vadd.f32 %v279_v49, %v258_v47  ;;  %450 = vmatmul.f32.vlgmr.msrb.gmra.mxu3 %v343_v48  ;;  %490 = vmatmul.f32.vlgmr.msra.gmra.mxu1 %v343_v48  ;;  %v299_v51 = vpop.f32.mrf.mxu3 }
 0x134   :  { %v300_v52 = vadd.f32 %v299_v51, %v280_v50 }
 0x136   :  { %v342_v53 = vmax.f32 %v300_v52, 0.0 }
 0x138   :  { %430 = vmatmul.f32.vlgmr.msrb.gmra.mxu2 %v342_v53  ;;  %470 = vmatmul.f32.vlgmr.msra.gmra.mxu0 %v342_v53 }
 0x1af   :  { %v491_v11 = vpop.f32.mrf.mxu1 }
 0x1b5   :  { %v471_v9 = vpop.f32.mrf.mxu0  ;;  %v451_v17 = vpop.f32.mrf.mxu3 }
 0x1b6   :  { %v472_v10 = vadd.f32 %v471_v9, %v411_v8 }
 0x1b8   :  { %v492_v12 = vadd.f32 %v491_v11, %v472_v10 }
 0x1ba   :  { %v495_v14 = vmax.f32 %v492_v12, 0.0 }
 0x1bb   :  { %v431_v15 = vpop.f32.mrf.mxu2 }
 0x1bc   :  { %v432_v16 = vadd.f32 %v431_v15, %v410_v13  ;;  %568 = vmatmul.f32.vlgmr.msra.gmra.mxu3 %v495_v14 }
 0x1be   :  { %v452_v18 = vadd.f32 %v451_v17, %v432_v16 }
 0x1c0   :  { %v494_v19 = vmax.f32 %v452_v18, 0.0 }
 0x1c2   :  { %548 = vmatmul.f32.vlgmr.msra.gmra.mxu2 %v494_v19 }
 0x23f   :  { %v569_v23 = vpop.f32.mrf.mxu3 }
 0x245   :  { %v549_v21 = vpop.f32.mrf.mxu2 }
 0x246   :  { %v550_v22 = vadd.f32 %v606_v20, %v549_v21 }
 0x248   :  { %v570_v24 = vadd.f32 %v569_v23, %v550_v22 }
 0x24a   :  { %572 = vst [vmem:[#allocation13] sm:$0xff] %v570_v24 }
 0x24b   :  { %583 = dma.vmem_to_hbm [thread:$0]  %s579_s21, 128, %s581_s3, [#allocation4]  }
 0x24c   :  { %783 = dma.done.wait [#allocation4], 128  }
 0x24d   :  { %784 = vsyncadd [#allocation4], 4294967168 }
 0x24e   :  { %588 = vsyncpa [#allocation3], 1 }
 0x24f   :  { %589 = vsyncpa [#allocation6], 1 }
 0x250   :  { %590 = vsyncpa [#allocation9], 1 }
 0x251   :  { %591 = vsyncpa [#allocation12], 1 }
 0x252   :  { %592 = vsyncpa [#allocation4], 1 }

</bundles_post_ra>
